<compile_context>
chip_gen: v6e
topology: v6e:2x2x1
jax: 0.10.0
libtpu: 0.0.40
codegen_flags: <defaults>
</compile_context>

<pallas_src>
import jax
import jax.numpy as jnp
from jax import lax
from jax.experimental import pallas as pl
from jax.experimental.pallas import tpu as pltpu
import numpy as np


def _bilstm_kernel(emb_ref,     # (T, BB, Hp)   time-major embeddings (forward order)
                   w_in_ref,    # (Hp, 8*Hp)    [Wih_f | Wih_b]   (dense, no zeros)
                   b_ref,       # (1, 8*Hp)     [b_f | b_b]
                   whh_f_ref,   # (Hp, 4*Hp)
                   whh_b_ref,   # (Hp, 4*Hp)
                   wout_f_ref,  # (Hp, 2)
                   wout_b_ref,  # (Hp, 2)
                   bout_ref,    # (1, 2)
                   h0_ref,      # (BB, 2*Hp)    [h0_f | h0_b]
                   c0_ref,      # (BB, 2*Hp)    [c0_f | c0_b]
                   out_ref,     # (T, BB, 2)
                   gates_ref,   # scratch (T, BB, 8*Hp) f32: input-gate pre-activations
                   hf_ref,      # scratch (T, BB, Hp)   f32: forward hidden history
                   hb_ref):     # scratch (T, BB, Hp)   f32: backward hidden history
    T, BB, Hp = emb_ref.shape
    G = 4 * Hp

    # ---- one-shot input projection: all timesteps, both directions, K=Hp ----
    emb_flat = emb_ref[...].reshape(T * BB, Hp)
    gp = jnp.dot(emb_flat, w_in_ref[...], preferred_element_type=jnp.float32)
    gates_ref[...] = (gp + b_ref[...]).reshape(T, BB, 2 * G)

    whh_f = whh_f_ref[...]     # hoisted out of the loop
    whh_b = whh_b_ref[...]

    def gate_update(g, c):
        # sigmoid over the whole (BB, 4Hp) slab keeps lanes dense; the cell
        # gate's sigmoid lanes are discarded (EUP filler off the serial path).
        s = jax.nn.sigmoid(g)
        i = s[:, 0 * Hp:1 * Hp]
        f = s[:, 1 * Hp:2 * Hp]
        o = s[:, 3 * Hp:4 * Hp]
        gg = jnp.tanh(g[:, 2 * Hp:3 * Hp])
        c_new = f * c + i * gg
        h_new = o * jnp.tanh(c_new)
        return h_new, c_new

    def step(t, carry):
        h_f, c_f, h_b, c_b = carry
        tb = T - 1 - t
        # Two dense K=Hp recurrence dots (no zero blocks on the critical path).
        rec_f = jnp.dot(h_f.astype(whh_f.dtype), whh_f,
                        preferred_element_type=jnp.float32)
        rec_b = jnp.dot(h_b.astype(whh_b.dtype), whh_b,
                        preferred_element_type=jnp.float32)
        g_f = gates_ref[t][:, 0:G] + rec_f
        g_b = gates_ref[tb][:, G:2 * G] + rec_b
        h_f, c_f = gate_update(g_f, c_f)
        h_b, c_b = gate_update(g_b, c_b)
        hf_ref[t] = h_f            # history only; projection deferred past loop
        hb_ref[tb] = h_b
        return (h_f, c_f, h_b, c_b)

    init = (h0_ref[:, 0:Hp].astype(jnp.float32),
            c0_ref[:, 0:Hp].astype(jnp.float32),
            h0_ref[:, Hp:2 * Hp].astype(jnp.float32),
            c0_ref[:, Hp:2 * Hp].astype(jnp.float32))
    # States live in the fori carry (vregs); partial unroll bounds code size.
    lax.fori_loop(0, T, step, init, unroll=min(T, 8))

    # ---- batched output projection, out of the recurrence loop --------------
    pf = jnp.dot(hf_ref[...].reshape(T * BB, Hp), wout_f_ref[...],
                 preferred_element_type=jnp.float32)
    pb = jnp.dot(hb_ref[...].reshape(T * BB, Hp), wout_b_ref[...],
                 preferred_element_type=jnp.float32)
    out_ref[...] = (pf + pb + bout_ref[...]).reshape(T, BB, 2).astype(out_ref.dtype)


def _round_up(n, m):
    return ((n + m - 1) // m) * m


def _pad_gate_cols(w, H, Hp):
    """(R, 4H) gate-blocked columns [i f g o] -> (R, 4Hp), zero-padded per gate."""
    r = w.shape[0]
    w = w.reshape(r, 4, H)
    w = jnp.pad(w, ((0, 0), (0, 0), (0, Hp - H)))
    return w.reshape(r, 4 * Hp)


def _pad_rows(w, H, Hp):
    return jnp.pad(w, ((0, Hp - H), (0, 0)))


def extractive_seq_tagging_forward(x, h0, c0, params, *,
                                   use_bf16_weights=False, num_batch_shards=1):
    """x: (batch, seq) int32 token ids; h0/c0: (2, batch, hidden).

    Returns logits of shape (seq, batch, 2), matching the PyTorch forward().
    num_batch_shards: set to the number of TensorCores (2 on v7x) for large
    batches; the default 1 keeps the whole batch in a single grid step.
    """
    H = params["embedding"].shape[1]
    B, T = x.shape
    # Pad hidden so 2*Hp is a multiple of 128 lanes (full-lane gate slabs).
    Hp = max(64, _round_up(H, 64))

    # --- glue (one-time): pad hidden dim and pack weights (no zero blocks) ---
    emb_tbl = jnp.pad(params["embedding"], ((0, 0), (0, Hp - H)))
    wih_f = _pad_gate_cols(_pad_rows(params["wih_f"], H, Hp), H, Hp)
    wih_b = _pad_gate_cols(_pad_rows(params["wih_b"], H, Hp), H, Hp)
    whh_f = _pad_gate_cols(_pad_rows(params["whh_f"], H, Hp), H, Hp)
    whh_b = _pad_gate_cols(_pad_rows(params["whh_b"], H, Hp), H, Hp)
    b_f = _pad_gate_cols(params["b_f"], H, Hp)
    b_b = _pad_gate_cols(params["b_b"], H, Hp)
    w_in = jnp.concatenate([wih_f, wih_b], axis=1)            # (Hp, 8Hp), dense
    bias = jnp.concatenate([b_f, b_b], axis=1)                # (1, 8Hp)
    wout_f = _pad_rows(params["wout"][:H], H, Hp)             # (Hp, 2)
    wout_b = _pad_rows(params["wout"][H:], H, Hp)             # (Hp, 2)
    bout = params["bout"]                                     # (1, 2)

    # --- glue: embedding gather + time-major transpose (no reversed copy) ----
    emb = jnp.take(emb_tbl, x, axis=0)                        # (B, T, Hp)
    emb = jnp.transpose(emb, (1, 0, 2))                       # (T, B, Hp)

    h0p = jnp.pad(h0, ((0, 0), (0, 0), (0, Hp - H)))
    c0p = jnp.pad(c0, ((0, 0), (0, 0), (0, Hp - H)))
    h0cat = jnp.concatenate([h0p[0], h0p[1]], axis=-1)        # (B, 2Hp)
    c0cat = jnp.concatenate([c0p[0], c0p[1]], axis=-1)

    # --- batch: whole padded batch per grid step; grid <= number of cores ----
    mult = 8 * num_batch_shards
    b_pad = (-B) % mult
    if b_pad:
        emb = jnp.pad(emb, ((0, 0), (0, b_pad), (0, 0)))
        h0cat = jnp.pad(h0cat, ((0, b_pad), (0, 0)))
        c0cat = jnp.pad(c0cat, ((0, b_pad), (0, 0)))
    B_pad = B + b_pad
    BB = B_pad // num_batch_shards

    if use_bf16_weights:
        # bf16 MXU operands; f32 gate math + f32 accumulation retained
        # (recommended on v6e/v7x; validate error compounding at large T).
        emb = emb.astype(jnp.bfloat16)
        w_in = w_in.astype(jnp.bfloat16)
        whh_f = whh_f.astype(jnp.bfloat16)
        whh_b = whh_b.astype(jnp.bfloat16)

    # TODO(synk): at production T/H, chunk the time axis (double-buffered
    # emit_pipeline over T-chunks) so the (T, BB, 8*Hp) gates scratch fits
    # v7x's 64 MiB VMEM and the input projection overlaps the recurrence.
    out = pl.pallas_call(
        _bilstm_kernel,
        out_shape=jax.ShapeDtypeStruct((T, B_pad, 2), jnp.float32),
        grid_spec=pltpu.PrefetchScalarGridSpec(
            num_scalar_prefetch=0,
            grid=(num_batch_shards,),
            in_specs=[
                pl.BlockSpec((T, BB, Hp), lambda b: (0, b, 0)),      # emb
                pl.BlockSpec((Hp, 8 * Hp), lambda b: (0, 0)),        # w_in
                pl.BlockSpec((1, 8 * Hp), lambda b: (0, 0)),         # bias
                pl.BlockSpec((Hp, 4 * Hp), lambda b: (0, 0)),        # whh_f
                pl.BlockSpec((Hp, 4 * Hp), lambda b: (0, 0)),        # whh_b
                pl.BlockSpec((Hp, 2), lambda b: (0, 0)),             # wout_f
                pl.BlockSpec((Hp, 2), lambda b: (0, 0)),             # wout_b
                pl.BlockSpec((1, 2), lambda b: (0, 0)),              # bout
                pl.BlockSpec((BB, 2 * Hp), lambda b: (b, 0)),        # h0cat
                pl.BlockSpec((BB, 2 * Hp), lambda b: (b, 0)),        # c0cat
            ],
            out_specs=pl.BlockSpec((T, BB, 2), lambda b: (0, b, 0)),
            scratch_shapes=[
                pltpu.VMEM((T, BB, 8 * Hp), jnp.float32),   # input-gate pre-acts
                pltpu.VMEM((T, BB, Hp), jnp.float32),       # fwd hidden history
                pltpu.VMEM((T, BB, Hp), jnp.float32),       # bwd hidden history
            ],
        ),
        compiler_params=pltpu.CompilerParams(
            dimension_semantics=("parallel",)),
    )(emb, w_in, bias, whh_f, whh_b, wout_f, wout_b, bout, h0cat, c0cat)
    return out[:, :B, :]


def _ref_forward(x, h0, c0, params):
    """Pure-JAX reference with identical semantics (for validation)."""
    emb = jnp.take(params["embedding"], x, axis=0).transpose(1, 0, 2)
    T, B, H = emb.shape

    def cell(x_t, h, c, wih, whh, b):
        g = x_t @ wih + h @ whh + b
        i = jax.nn.sigmoid(g[:, :H])
        f = jax.nn.sigmoid(g[:, H:2 * H])
        gg = jnp.tanh(g[:, 2 * H:3 * H])
        o = jax.nn.sigmoid(g[:, 3 * H:])
        c2 = f * c + i * gg
        return o * jnp.tanh(c2), c2

    hf, cf = h0[0], c0[0]
    hb, cb = h0[1], c0[1]
    hs_f = []
    hs_b = [None] * T
    for t in range(T):
        hf, cf = cell(emb[t], hf, cf, params["wih_f"], params["whh_f"], params["b_f"])
        hs_f.append(hf)
    for t in range(T - 1, -1, -1):
        hb, cb = cell(emb[t], hb, cb, params["wih_b"], params["whh_b"], params["b_b"])
        hs_b[t] = hb
    hcat = jnp.concatenate([jnp.stack(hs_f), jnp.stack(hs_b)], axis=-1)  # (T,B,2H)
    return hcat @ params["wout"] + params["bout"]


def _init_params(key, vocab, hidden):
    k = 1.0 / np.sqrt(hidden)
    keys = jax.random.split(key, 9)
    u = lambda kk, shape: jax.random.uniform(kk, shape, jnp.float32, -k, k)
    return {
        # pretrained embedding table (synthetic, deterministic)
        "embedding": jax.random.normal(keys[0], (vocab, hidden), jnp.float32) * 0.1,
        # LSTM weights stored pre-transposed: x @ W_ih, h @ W_hh; gate order i,f,g,o
        "wih_f": u(keys[1], (hidden, 4 * hidden)),
        "whh_f": u(keys[2], (hidden, 4 * hidden)),
        "b_f":   u(keys[3], (1, 4 * hidden)),   # b_ih + b_hh folded together
        "wih_b": u(keys[4], (hidden, 4 * hidden)),
        "whh_b": u(keys[5], (hidden, 4 * hidden)),
        "b_b":   u(keys[6], (1, 4 * hidden)),
        # output Linear(2*hidden, 2)
        "wout":  u(keys[7], (2 * hidden, 2)),
        "bout":  u(keys[8], (1, 2)),
    }


if __name__ == "__main__":
    batch, seq, hidden, vocab = 2, 8, 32, 50

    key = jax.random.PRNGKey(0)
    kp, kx = jax.random.split(key)
    params = _init_params(kp, vocab, hidden)

    x = jax.random.randint(kx, (batch, seq), 0, vocab, dtype=jnp.int32)
    # initHidden: zeros (2, batch, hidden).
    # TODO(synk): the original forward passes a single `hidden` tensor to nn.LSTM,
    # which PyTorch would reject; we use the intended (h0, c0) = zeros semantics.
    h0 = jnp.zeros((2, batch, hidden), jnp.float32)
    c0 = jnp.zeros((2, batch, hidden), jnp.float32)

    out = extractive_seq_tagging_forward(x, h0, c0, params)
    out = jax.block_until_ready(out)

    ref = jax.block_until_ready(_ref_forward(x, h0, c0, params))
    assert out.shape == (seq, batch, 2)
    assert np.allclose(np.asarray(out), np.asarray(ref), rtol=1e-2, atol=1e-2)

    print("KERNEL_OK")
</pallas_src>

<mosaic_0001>
module attributes {stable_mosaic.version = 11 : i64} {
  func.func @_bilstm_kernel(%arg0: i32, %arg1: memref<8x8x64xf32, #tpu.memory_space<vmem>>, %arg2: memref<64x512xf32, #tpu.memory_space<vmem>>, %arg3: memref<1x512xf32, #tpu.memory_space<vmem>>, %arg4: memref<64x256xf32, #tpu.memory_space<vmem>>, %arg5: memref<64x256xf32, #tpu.memory_space<vmem>>, %arg6: memref<64x2xf32, #tpu.memory_space<vmem>>, %arg7: memref<64x2xf32, #tpu.memory_space<vmem>>, %arg8: memref<1x2xf32, #tpu.memory_space<vmem>>, %arg9: memref<8x128xf32, #tpu.memory_space<vmem>>, %arg10: memref<8x128xf32, #tpu.memory_space<vmem>>, %arg11: memref<8x8x2xf32, #tpu.memory_space<vmem>>, %arg12: memref<8x8x512xf32, #tpu.memory_space<vmem>>, %arg13: memref<8x8x64xf32, #tpu.memory_space<vmem>>, %arg14: memref<8x8x64xf32, #tpu.memory_space<vmem>>) attributes {dimension_semantics = [#tpu.dimension_semantics<parallel>], iteration_bounds = array<i64: 1>, scalar_prefetch = 0 : i64, scratch_operands = 3 : i64, tpu.core_type = #tpu.core_type<tc>, window_params = [{transform_indices = @transform_0, window_bounds = array<i64: 8, 8, 64>}, {pipeline_mode = #tpu.pipeline_mode<synchronous>, transform_indices = @transform_1, window_bounds = array<i64: 64, 512>}, {pipeline_mode = #tpu.pipeline_mode<synchronous>, transform_indices = @transform_2, window_bounds = array<i64: 1, 512>}, {pipeline_mode = #tpu.pipeline_mode<synchronous>, transform_indices = @transform_3, window_bounds = array<i64: 64, 256>}, {pipeline_mode = #tpu.pipeline_mode<synchronous>, transform_indices = @transform_4, window_bounds = array<i64: 64, 256>}, {pipeline_mode = #tpu.pipeline_mode<synchronous>, transform_indices = @transform_5, window_bounds = array<i64: 64, 2>}, {pipeline_mode = #tpu.pipeline_mode<synchronous>, transform_indices = @transform_6, window_bounds = array<i64: 64, 2>}, {pipeline_mode = #tpu.pipeline_mode<synchronous>, transform_indices = @transform_7, window_bounds = array<i64: 1, 2>}, {transform_indices = @transform_8, window_bounds = array<i64: 8, 128>}, {transform_indices = @transform_9, window_bounds = array<i64: 8, 128>}, {transform_indices = @transform_10, window_bounds = array<i64: 8, 8, 2>}]} {
    %c0 = arith.constant 0 : index
    %c0_0 = arith.constant 0 : index
    %c0_1 = arith.constant 0 : index
    %0 = vector.load %arg1[%c0, %c0_0, %c0_1] : memref<8x8x64xf32, #tpu.memory_space<vmem>>, vector<8x8x64xf32>
    %1 = vector.shape_cast %0 : vector<8x8x64xf32> to vector<64x64xf32>
    %c0_2 = arith.constant 0 : index
    %c0_3 = arith.constant 0 : index
    %2 = vector.load %arg2[%c0_2, %c0_3] : memref<64x512xf32, #tpu.memory_space<vmem>>, vector<64x512xf32>
    %cst = arith.constant dense<0.000000e+00> : vector<64x512xf32>
    %3 = tpu.matmul %1, %2, %cst {dimension_numbers = #tpu.dot_dimension_numbers<[1], [0], [0], [1], [0, 0, 1, 1], [], []>} : vector<64x64xf32>, vector<64x512xf32>, vector<64x512xf32> -> vector<64x512xf32>
    %c0_4 = arith.constant 0 : index
    %c0_5 = arith.constant 0 : index
    %4 = vector.load %arg3[%c0_4, %c0_5] : memref<1x512xf32, #tpu.memory_space<vmem>>, vector<1x512xf32>
    %5 = vector.broadcast %4 : vector<1x512xf32> to vector<64x512xf32>
    %6 = arith.addf %3, %5 : vector<64x512xf32>
    %7 = vector.shape_cast %6 : vector<64x512xf32> to vector<8x8x512xf32>
    %c0_6 = arith.constant 0 : index
    %c0_7 = arith.constant 0 : index
    %c0_8 = arith.constant 0 : index
    %8 = vector.load %arg12[%c0_6, %c0_7, %c0_8] : memref<8x8x512xf32, #tpu.memory_space<vmem>>, vector<8x8x512xf32>
    tpu.vector_store %arg12[%c0_6, %c0_7, %c0_8], %7 {strides = array<i32>} : memref<8x8x512xf32, #tpu.memory_space<vmem>>, vector<8x8x512xf32>,
    %c0_9 = arith.constant 0 : index
    %c0_10 = arith.constant 0 : index
    %9 = vector.load %arg4[%c0_9, %c0_10] : memref<64x256xf32, #tpu.memory_space<vmem>>, vector<64x256xf32>
    %c0_11 = arith.constant 0 : index
    %c0_12 = arith.constant 0 : index
    %10 = vector.load %arg5[%c0_11, %c0_12] : memref<64x256xf32, #tpu.memory_space<vmem>>, vector<64x256xf32>
    %c0_13 = arith.constant 0 : index
    %c0_14 = arith.constant 0 : index
    %11 = vector.load %arg9[%c0_13, %c0_14] : memref<8x128xf32, #tpu.memory_space<vmem>>, vector<8x64xf32>
    %c0_15 = arith.constant 0 : index
    %c0_16 = arith.constant 0 : index
    %12 = vector.load %arg10[%c0_15, %c0_16] : memref<8x128xf32, #tpu.memory_space<vmem>>, vector<8x64xf32>
    %c0_17 = arith.constant 0 : index
    %c64 = arith.constant 64 : index
    %13 = vector.load %arg9[%c0_17, %c64] : memref<8x128xf32, #tpu.memory_space<vmem>>, vector<8x64xf32>
    %c0_18 = arith.constant 0 : index
    %c64_19 = arith.constant 64 : index
    %14 = vector.load %arg10[%c0_18, %c64_19] : memref<8x128xf32, #tpu.memory_space<vmem>>, vector<8x64xf32>
    %c0_i32 = arith.constant 0 : i32
    %c7_i32 = arith.constant 7 : i32
    %15 = arith.subi %c7_i32, %c0_i32 : i32
    %cst_20 = arith.constant dense<0.000000e+00> : vector<8x256xf32>
    %16 = tpu.matmul %11, %9, %cst_20 {dimension_numbers = #tpu.dot_dimension_numbers<[1], [0], [0], [1], [0, 0, 1, 1], [], []>} : vector<8x64xf32>, vector<64x256xf32>, vector<8x256xf32> -> vector<8x256xf32>
    %cst_21 = arith.constant dense<0.000000e+00> : vector<8x256xf32>
    %17 = tpu.matmul %13, %10, %cst_21 {dimension_numbers = #tpu.dot_dimension_numbers<[1], [0], [0], [1], [0, 0, 1, 1], [], []>} : vector<8x64xf32>, vector<64x256xf32>, vector<8x256xf32> -> vector<8x256xf32>
    %18 = arith.index_cast %c0_i32 : i32 to index
    %c0_22 = arith.constant 0 : index
    %c0_23 = arith.constant 0 : index
    %19 = vector.load %arg12[%18, %c0_22, %c0_23] : memref<8x8x512xf32, #tpu.memory_space<vmem>>, vector<1x8x512xf32>
    %20 = vector.shape_cast %19 : vector<1x8x512xf32> to vector<8x512xf32>
    %21 = vector.extract_strided_slice %20 {offsets = [0, 0], sizes = [8, 256], strides = [1, 1]} : vector<8x512xf32> to vector<8x256xf32>
    %22 = arith.addf %21, %16 : vector<8x256xf32>
    %23 = arith.index_cast %15 : i32 to index
    %c0_24 = arith.constant 0 : index
    %c0_25 = arith.constant 0 : index
    %24 = vector.load %arg12[%23, %c0_24, %c0_25] : memref<8x8x512xf32, #tpu.memory_space<vmem>>, vector<1x8x512xf32>
    %25 = vector.shape_cast %24 : vector<1x8x512xf32> to vector<8x512xf32>
    %26 = vector.extract_strided_slice %25 {offsets = [0, 256], sizes = [8, 256], strides = [1, 1]} : vector<8x512xf32> to vector<8x256xf32>
    %27 = arith.addf %26, %17 : vector<8x256xf32>
    %28 = arith.negf %22 : vector<8x256xf32>
    %29 = math.exp %28 : vector<8x256xf32>
    %cst_26 = arith.constant 1.000000e+00 : f32
    %30 = vector.broadcast %cst_26 : f32 to vector<8x256xf32>
    %31 = arith.addf %30, %29 : vector<8x256xf32>
    %32 = arith.divf %30, %31 : vector<8x256xf32>
    %33 = vector.extract_strided_slice %32 {offsets = [0, 0], sizes = [8, 64], strides = [1, 1]} : vector<8x256xf32> to vector<8x64xf32>
    %34 = vector.extract_strided_slice %32 {offsets = [0, 64], sizes = [8, 64], strides = [1, 1]} : vector<8x256xf32> to vector<8x64xf32>
    %35 = vector.extract_strided_slice %32 {offsets = [0, 192], sizes = [8, 64], strides = [1, 1]} : vector<8x256xf32> to vector<8x64xf32>
    %36 = vector.extract_strided_slice %22 {offsets = [0, 128], sizes = [8, 64], strides = [1, 1]} : vector<8x256xf32> to vector<8x64xf32>
    %37 = math.tanh %36 : vector<8x64xf32>
    %38 = arith.mulf %34, %12 : vector<8x64xf32>
    %39 = arith.mulf %33, %37 : vector<8x64xf32>
    %40 = arith.addf %38, %39 : vector<8x64xf32>
    %41 = math.tanh %40 : vector<8x64xf32>
    %42 = arith.mulf %35, %41 : vector<8x64xf32>
    %43 = arith.negf %27 : vector<8x256xf32>
    %44 = math.exp %43 : vector<8x256xf32>
    %cst_27 = arith.constant 1.000000e+00 : f32
    %45 = vector.broadcast %cst_27 : f32 to vector<8x256xf32>
    %46 = arith.addf %45, %44 : vector<8x256xf32>
    %47 = arith.divf %45, %46 : vector<8x256xf32>
    %48 = vector.extract_strided_slice %47 {offsets = [0, 0], sizes = [8, 64], strides = [1, 1]} : vector<8x256xf32> to vector<8x64xf32>
    %49 = vector.extract_strided_slice %47 {offsets = [0, 64], sizes = [8, 64], strides = [1, 1]} : vector<8x256xf32> to vector<8x64xf32>
    %50 = vector.extract_strided_slice %47 {offsets = [0, 192], sizes = [8, 64], strides = [1, 1]} : vector<8x256xf32> to vector<8x64xf32>
    %51 = vector.extract_strided_slice %27 {offsets = [0, 128], sizes = [8, 64], strides = [1, 1]} : vector<8x256xf32> to vector<8x64xf32>
    %52 = math.tanh %51 : vector<8x64xf32>
    %53 = arith.mulf %49, %14 : vector<8x64xf32>
    %54 = arith.mulf %48, %52 : vector<8x64xf32>
    %55 = arith.addf %53, %54 : vector<8x64xf32>
    %56 = math.tanh %55 : vector<8x64xf32>
    %57 = arith.mulf %50, %56 : vector<8x64xf32>
    %58 = arith.index_cast %c0_i32 : i32 to index
    %c0_28 = arith.constant 0 : index
    %c0_29 = arith.constant 0 : index
    %59 = vector.load %arg13[%58, %c0_28, %c0_29] : memref<8x8x64xf32, #tpu.memory_space<vmem>>, vector<1x8x64xf32>
    %60 = vector.shape_cast %59 : vector<1x8x64xf32> to vector<8x64xf32>
    %61 = vector.shape_cast %42 : vector<8x64xf32> to vector<1x8x64xf32>
    tpu.vector_store %arg13[%58, %c0_28, %c0_29], %61 {strides = array<i32>} : memref<8x8x64xf32, #tpu.memory_space<vmem>>, vector<1x8x64xf32>,
    %62 = arith.index_cast %15 : i32 to index
    %c0_30 = arith.constant 0 : index
    %c0_31 = arith.constant 0 : index
    %63 = vector.load %arg14[%62, %c0_30, %c0_31] : memref<8x8x64xf32, #tpu.memory_space<vmem>>, vector<1x8x64xf32>
    %64 = vector.shape_cast %63 : vector<1x8x64xf32> to vector<8x64xf32>
    %65 = vector.shape_cast %57 : vector<8x64xf32> to vector<1x8x64xf32>
    tpu.vector_store %arg14[%62, %c0_30, %c0_31], %65 {strides = array<i32>} : memref<8x8x64xf32, #tpu.memory_space<vmem>>, vector<1x8x64xf32>,
    %c1_i32 = arith.constant 1 : i32
    %c7_i32_32 = arith.constant 7 : i32
    %66 = arith.subi %c7_i32_32, %c1_i32 : i32
    %cst_33 = arith.constant dense<0.000000e+00> : vector<8x256xf32>
    %67 = tpu.matmul %42, %9, %cst_33 {dimension_numbers = #tpu.dot_dimension_numbers<[1], [0], [0], [1], [0, 0, 1, 1], [], []>} : vector<8x64xf32>, vector<64x256xf32>, vector<8x256xf32> -> vector<8x256xf32>
    %cst_34 = arith.constant dense<0.000000e+00> : vector<8x256xf32>
    %68 = tpu.matmul %57, %10, %cst_34 {dimension_numbers = #tpu.dot_dimension_numbers<[1], [0], [0], [1], [0, 0, 1, 1], [], []>} : vector<8x64xf32>, vector<64x256xf32>, vector<8x256xf32> -> vector<8x256xf32>
    %69 = arith.index_cast %c1_i32 : i32 to index
    %c0_35 = arith.constant 0 : index
    %c0_36 = arith.constant 0 : index
    %70 = vector.load %arg12[%69, %c0_35, %c0_36] : memref<8x8x512xf32, #tpu.memory_space<vmem>>, vector<1x8x512xf32>
    %71 = vector.shape_cast %70 : vector<1x8x512xf32> to vector<8x512xf32>
    %72 = vector.extract_strided_slice %71 {offsets = [0, 0], sizes = [8, 256], strides = [1, 1]} : vector<8x512xf32> to vector<8x256xf32>
    %73 = arith.addf %72, %67 : vector<8x256xf32>
    %74 = arith.index_cast %66 : i32 to index
    %c0_37 = arith.constant 0 : index
    %c0_38 = arith.constant 0 : index
    %75 = vector.load %arg12[%74, %c0_37, %c0_38] : memref<8x8x512xf32, #tpu.memory_space<vmem>>, vector<1x8x512xf32>
    %76 = vector.shape_cast %75 : vector<1x8x512xf32> to vector<8x512xf32>
    %77 = vector.extract_strided_slice %76 {offsets = [0, 256], sizes = [8, 256], strides = [1, 1]} : vector<8x512xf32> to vector<8x256xf32>
    %78 = arith.addf %77, %68 : vector<8x256xf32>
    %79 = arith.negf %73 : vector<8x256xf32>
    %80 = math.exp %79 : vector<8x256xf32>
    %cst_39 = arith.constant 1.000000e+00 : f32
    %81 = vector.broadcast %cst_39 : f32 to vector<8x256xf32>
    %82 = arith.addf %81, %80 : vector<8x256xf32>
    %83 = arith.divf %81, %82 : vector<8x256xf32>
    %84 = vector.extract_strided_slice %83 {offsets = [0, 0], sizes = [8, 64], strides = [1, 1]} : vector<8x256xf32> to vector<8x64xf32>
    %85 = vector.extract_strided_slice %83 {offsets = [0, 64], sizes = [8, 64], strides = [1, 1]} : vector<8x256xf32> to vector<8x64xf32>
    %86 = vector.extract_strided_slice %83 {offsets = [0, 192], sizes = [8, 64], strides = [1, 1]} : vector<8x256xf32> to vector<8x64xf32>
    %87 = vector.extract_strided_slice %73 {offsets = [0, 128], sizes = [8, 64], strides = [1, 1]} : vector<8x256xf32> to vector<8x64xf32>
    %88 = math.tanh %87 : vector<8x64xf32>
    %89 = arith.mulf %85, %40 : vector<8x64xf32>
    %90 = arith.mulf %84, %88 : vector<8x64xf32>
    %91 = arith.addf %89, %90 : vector<8x64xf32>
    %92 = math.tanh %91 : vector<8x64xf32>
    %93 = arith.mulf %86, %92 : vector<8x64xf32>
    %94 = arith.negf %78 : vector<8x256xf32>
    %95 = math.exp %94 : vector<8x256xf32>
    %cst_40 = arith.constant 1.000000e+00 : f32
    %96 = vector.broadcast %cst_40 : f32 to vector<8x256xf32>
    %97 = arith.addf %96, %95 : vector<8x256xf32>
    %98 = arith.divf %96, %97 : vector<8x256xf32>
    %99 = vector.extract_strided_slice %98 {offsets = [0, 0], sizes = [8, 64], strides = [1, 1]} : vector<8x256xf32> to vector<8x64xf32>
    %100 = vector.extract_strided_slice %98 {offsets = [0, 64], sizes = [8, 64], strides = [1, 1]} : vector<8x256xf32> to vector<8x64xf32>
    %101 = vector.extract_strided_slice %98 {offsets = [0, 192], sizes = [8, 64], strides = [1, 1]} : vector<8x256xf32> to vector<8x64xf32>
    %102 = vector.extract_strided_slice %78 {offsets = [0, 128], sizes = [8, 64], strides = [1, 1]} : vector<8x256xf32> to vector<8x64xf32>
    %103 = math.tanh %102 : vector<8x64xf32>
    %104 = arith.mulf %100, %55 : vector<8x64xf32>
    %105 = arith.mulf %99, %103 : vector<8x64xf32>
    %106 = arith.addf %104, %105 : vector<8x64xf32>
    %107 = math.tanh %106 : vector<8x64xf32>
    %108 = arith.mulf %101, %107 : vector<8x64xf32>
    %109 = arith.index_cast %c1_i32 : i32 to index
    %c0_41 = arith.constant 0 : index
    %c0_42 = arith.constant 0 : index
    %110 = vector.load %arg13[%109, %c0_41, %c0_42] : memref<8x8x64xf32, #tpu.memory_space<vmem>>, vector<1x8x64xf32>
    %111 = vector.shape_cast %110 : vector<1x8x64xf32> to vector<8x64xf32>
    %112 = vector.shape_cast %93 : vector<8x64xf32> to vector<1x8x64xf32>
    tpu.vector_store %arg13[%109, %c0_41, %c0_42], %112 {strides = array<i32>} : memref<8x8x64xf32, #tpu.memory_space<vmem>>, vector<1x8x64xf32>,
    %113 = arith.index_cast %66 : i32 to index
    %c0_43 = arith.constant 0 : index
    %c0_44 = arith.constant 0 : index
    %114 = vector.load %arg14[%113, %c0_43, %c0_44] : memref<8x8x64xf32, #tpu.memory_space<vmem>>, vector<1x8x64xf32>
    %115 = vector.shape_cast %114 : vector<1x8x64xf32> to vector<8x64xf32>
    %116 = vector.shape_cast %108 : vector<8x64xf32> to vector<1x8x64xf32>
    tpu.vector_store %arg14[%113, %c0_43, %c0_44], %116 {strides = array<i32>} : memref<8x8x64xf32, #tpu.memory_space<vmem>>, vector<1x8x64xf32>,
    %c2_i32 = arith.constant 2 : i32
    %c7_i32_45 = arith.constant 7 : i32
    %117 = arith.subi %c7_i32_45, %c2_i32 : i32
    %cst_46 = arith.constant dense<0.000000e+00> : vector<8x256xf32>
    %118 = tpu.matmul %93, %9, %cst_46 {dimension_numbers = #tpu.dot_dimension_numbers<[1], [0], [0], [1], [0, 0, 1, 1], [], []>} : vector<8x64xf32>, vector<64x256xf32>, vector<8x256xf32> -> vector<8x256xf32>
    %cst_47 = arith.constant dense<0.000000e+00> : vector<8x256xf32>
    %119 = tpu.matmul %108, %10, %cst_47 {dimension_numbers = #tpu.dot_dimension_numbers<[1], [0], [0], [1], [0, 0, 1, 1], [], []>} : vector<8x64xf32>, vector<64x256xf32>, vector<8x256xf32> -> vector<8x256xf32>
    %120 = arith.index_cast %c2_i32 : i32 to index
    %c0_48 = arith.constant 0 : index
    %c0_49 = arith.constant 0 : index
    %121 = vector.load %arg12[%120, %c0_48, %c0_49] : memref<8x8x512xf32, #tpu.memory_space<vmem>>, vector<1x8x512xf32>
    %122 = vector.shape_cast %121 : vector<1x8x512xf32> to vector<8x512xf32>
    %123 = vector.extract_strided_slice %122 {offsets = [0, 0], sizes = [8, 256], strides = [1, 1]} : vector<8x512xf32> to vector<8x256xf32>
    %124 = arith.addf %123, %118 : vector<8x256xf32>
    %125 = arith.index_cast %117 : i32 to index
    %c0_50 = arith.constant 0 : index
    %c0_51 = arith.constant 0 : index
    %126 = vector.load %arg12[%125, %c0_50, %c0_51] : memref<8x8x512xf32, #tpu.memory_space<vmem>>, vector<1x8x512xf32>
    %127 = vector.shape_cast %126 : vector<1x8x512xf32> to vector<8x512xf32>
    %128 = vector.extract_strided_slice %127 {offsets = [0, 256], sizes = [8, 256], strides = [1, 1]} : vector<8x512xf32> to vector<8x256xf32>
    %129 = arith.addf %128, %119 : vector<8x256xf32>
    %130 = arith.negf %124 : vector<8x256xf32>
    %131 = math.exp %130 : vector<8x256xf32>
    %cst_52 = arith.constant 1.000000e+00 : f32
    %132 = vector.broadcast %cst_52 : f32 to vector<8x256xf32>
    %133 = arith.addf %132, %131 : vector<8x256xf32>
    %134 = arith.divf %132, %133 : vector<8x256xf32>
    %135 = vector.extract_strided_slice %134 {offsets = [0, 0], sizes = [8, 64], strides = [1, 1]} : vector<8x256xf32> to vector<8x64xf32>
    %136 = vector.extract_strided_slice %134 {offsets = [0, 64], sizes = [8, 64], strides = [1, 1]} : vector<8x256xf32> to vector<8x64xf32>
    %137 = vector.extract_strided_slice %134 {offsets = [0, 192], sizes = [8, 64], strides = [1, 1]} : vector<8x256xf32> to vector<8x64xf32>
    %138 = vector.extract_strided_slice %124 {offsets = [0, 128], sizes = [8, 64], strides = [1, 1]} : vector<8x256xf32> to vector<8x64xf32>
    %139 = math.tanh %138 : vector<8x64xf32>
    %140 = arith.mulf %136, %91 : vector<8x64xf32>
    %141 = arith.mulf %135, %139 : vector<8x64xf32>
    %142 = arith.addf %140, %141 : vector<8x64xf32>
    %143 = math.tanh %142 : vector<8x64xf32>
    %144 = arith.mulf %137, %143 : vector<8x64xf32>
    %145 = arith.negf %129 : vector<8x256xf32>
    %146 = math.exp %145 : vector<8x256xf32>
    %cst_53 = arith.constant 1.000000e+00 : f32
    %147 = vector.broadcast %cst_53 : f32 to vector<8x256xf32>
    %148 = arith.addf %147, %146 : vector<8x256xf32>
    %149 = arith.divf %147, %148 : vector<8x256xf32>
    %150 = vector.extract_strided_slice %149 {offsets = [0, 0], sizes = [8, 64], strides = [1, 1]} : vector<8x256xf32> to vector<8x64xf32>
    %151 = vector.extract_strided_slice %149 {offsets = [0, 64], sizes = [8, 64], strides = [1, 1]} : vector<8x256xf32> to vector<8x64xf32>
    %152 = vector.extract_strided_slice %149 {offsets = [0, 192], sizes = [8, 64], strides = [1, 1]} : vector<8x256xf32> to vector<8x64xf32>
    %153 = vector.extract_strided_slice %129 {offsets = [0, 128], sizes = [8, 64], strides = [1, 1]} : vector<8x256xf32> to vector<8x64xf32>
    %154 = math.tanh %153 : vector<8x64xf32>
    %155 = arith.mulf %151, %106 : vector<8x64xf32>
    %156 = arith.mulf %150, %154 : vector<8x64xf32>
    %157 = arith.addf %155, %156 : vector<8x64xf32>
    %158 = math.tanh %157 : vector<8x64xf32>
    %159 = arith.mulf %152, %158 : vector<8x64xf32>
    %160 = arith.index_cast %c2_i32 : i32 to index
    %c0_54 = arith.constant 0 : index
    %c0_55 = arith.constant 0 : index
    %161 = vector.load %arg13[%160, %c0_54, %c0_55] : memref<8x8x64xf32, #tpu.memory_space<vmem>>, vector<1x8x64xf32>
    %162 = vector.shape_cast %161 : vector<1x8x64xf32> to vector<8x64xf32>
    %163 = vector.shape_cast %144 : vector<8x64xf32> to vector<1x8x64xf32>
    tpu.vector_store %arg13[%160, %c0_54, %c0_55], %163 {strides = array<i32>} : memref<8x8x64xf32, #tpu.memory_space<vmem>>, vector<1x8x64xf32>,
    %164 = arith.index_cast %117 : i32 to index
    %c0_56 = arith.constant 0 : index
    %c0_57 = arith.constant 0 : index
    %165 = vector.load %arg14[%164, %c0_56, %c0_57] : memref<8x8x64xf32, #tpu.memory_space<vmem>>, vector<1x8x64xf32>
    %166 = vector.shape_cast %165 : vector<1x8x64xf32> to vector<8x64xf32>
    %167 = vector.shape_cast %159 : vector<8x64xf32> to vector<1x8x64xf32>
    tpu.vector_store %arg14[%164, %c0_56, %c0_57], %167 {strides = array<i32>} : memref<8x8x64xf32, #tpu.memory_space<vmem>>, vector<1x8x64xf32>,
    %c3_i32 = arith.constant 3 : i32
    %c7_i32_58 = arith.constant 7 : i32
    %168 = arith.subi %c7_i32_58, %c3_i32 : i32
    %cst_59 = arith.constant dense<0.000000e+00> : vector<8x256xf32>
    %169 = tpu.matmul %144, %9, %cst_59 {dimension_numbers = #tpu.dot_dimension_numbers<[1], [0], [0], [1], [0, 0, 1, 1], [], []>} : vector<8x64xf32>, vector<64x256xf32>, vector<8x256xf32> -> vector<8x256xf32>
    %cst_60 = arith.constant dense<0.000000e+00> : vector<8x256xf32>
    %170 = tpu.matmul %159, %10, %cst_60 {dimension_numbers = #tpu.dot_dimension_numbers<[1], [0], [0], [1], [0, 0, 1, 1], [], []>} : vector<8x64xf32>, vector<64x256xf32>, vector<8x256xf32> -> vector<8x256xf32>
    %171 = arith.index_cast %c3_i32 : i32 to index
    %c0_61 = arith.constant 0 : index
    %c0_62 = arith.constant 0 : index
    %172 = vector.load %arg12[%171, %c0_61, %c0_62] : memref<8x8x512xf32, #tpu.memory_space<vmem>>, vector<1x8x512xf32>
    %173 = vector.shape_cast %172 : vector<1x8x512xf32> to vector<8x512xf32>
    %174 = vector.extract_strided_slice %173 {offsets = [0, 0], sizes = [8, 256], strides = [1, 1]} : vector<8x512xf32> to vector<8x256xf32>
    %175 = arith.addf %174, %169 : vector<8x256xf32>
    %176 = arith.index_cast %168 : i32 to index
    %c0_63 = arith.constant 0 : index
    %c0_64 = arith.constant 0 : index
    %177 = vector.load %arg12[%176, %c0_63, %c0_64] : memref<8x8x512xf32, #tpu.memory_space<vmem>>, vector<1x8x512xf32>
    %178 = vector.shape_cast %177 : vector<1x8x512xf32> to vector<8x512xf32>
    %179 = vector.extract_strided_slice %178 {offsets = [0, 256], sizes = [8, 256], strides = [1, 1]} : vector<8x512xf32> to vector<8x256xf32>
    %180 = arith.addf %179, %170 : vector<8x256xf32>
    %181 = arith.negf %175 : vector<8x256xf32>
    %182 = math.exp %181 : vector<8x256xf32>
    %cst_65 = arith.constant 1.000000e+00 : f32
    %183 = vector.broadcast %cst_65 : f32 to vector<8x256xf32>
    %184 = arith.addf %183, %182 : vector<8x256xf32>
    %185 = arith.divf %183, %184 : vector<8x256xf32>
    %186 = vector.extract_strided_slice %185 {offsets = [0, 0], sizes = [8, 64], strides = [1, 1]} : vector<8x256xf32> to vector<8x64xf32>
    %187 = vector.extract_strided_slice %185 {offsets = [0, 64], sizes = [8, 64], strides = [1, 1]} : vector<8x256xf32> to vector<8x64xf32>
    %188 = vector.extract_strided_slice %185 {offsets = [0, 192], sizes = [8, 64], strides = [1, 1]} : vector<8x256xf32> to vector<8x64xf32>
    %189 = vector.extract_strided_slice %175 {offsets = [0, 128], sizes = [8, 64], strides = [1, 1]} : vector<8x256xf32> to vector<8x64xf32>
    %190 = math.tanh %189 : vector<8x64xf32>
    %191 = arith.mulf %187, %142 : vector<8x64xf32>
    %192 = arith.mulf %186, %190 : vector<8x64xf32>
    %193 = arith.addf %191, %192 : vector<8x64xf32>
    %194 = math.tanh %193 : vector<8x64xf32>
    %195 = arith.mulf %188, %194 : vector<8x64xf32>
    %196 = arith.negf %180 : vector<8x256xf32>
    %197 = math.exp %196 : vector<8x256xf32>
    %cst_66 = arith.constant 1.000000e+00 : f32
    %198 = vector.broadcast %cst_66 : f32 to vector<8x256xf32>
    %199 = arith.addf %198, %197 : vector<8x256xf32>
    %200 = arith.divf %198, %199 : vector<8x256xf32>
    %201 = vector.extract_strided_slice %200 {offsets = [0, 0], sizes = [8, 64], strides = [1, 1]} : vector<8x256xf32> to vector<8x64xf32>
    %202 = vector.extract_strided_slice %200 {offsets = [0, 64], sizes = [8, 64], strides = [1, 1]} : vector<8x256xf32> to vector<8x64xf32>
    %203 = vector.extract_strided_slice %200 {offsets = [0, 192], sizes = [8, 64], strides = [1, 1]} : vector<8x256xf32> to vector<8x64xf32>
    %204 = vector.extract_strided_slice %180 {offsets = [0, 128], sizes = [8, 64], strides = [1, 1]} : vector<8x256xf32> to vector<8x64xf32>
    %205 = math.tanh %204 : vector<8x64xf32>
    %206 = arith.mulf %202, %157 : vector<8x64xf32>
    %207 = arith.mulf %201, %205 : vector<8x64xf32>
    %208 = arith.addf %206, %207 : vector<8x64xf32>
    %209 = math.tanh %208 : vector<8x64xf32>
    %210 = arith.mulf %203, %209 : vector<8x64xf32>
    %211 = arith.index_cast %c3_i32 : i32 to index
    %c0_67 = arith.constant 0 : index
    %c0_68 = arith.constant 0 : index
    %212 = vector.load %arg13[%211, %c0_67, %c0_68] : memref<8x8x64xf32, #tpu.memory_space<vmem>>, vector<1x8x64xf32>
    %213 = vector.shape_cast %212 : vector<1x8x64xf32> to vector<8x64xf32>
    %214 = vector.shape_cast %195 : vector<8x64xf32> to vector<1x8x64xf32>
    tpu.vector_store %arg13[%211, %c0_67, %c0_68], %214 {strides = array<i32>} : memref<8x8x64xf32, #tpu.memory_space<vmem>>, vector<1x8x64xf32>,
    %215 = arith.index_cast %168 : i32 to index
    %c0_69 = arith.constant 0 : index
    %c0_70 = arith.constant 0 : index
    %216 = vector.load %arg14[%215, %c0_69, %c0_70] : memref<8x8x64xf32, #tpu.memory_space<vmem>>, vector<1x8x64xf32>
    %217 = vector.shape_cast %216 : vector<1x8x64xf32> to vector<8x64xf32>
    %218 = vector.shape_cast %210 : vector<8x64xf32> to vector<1x8x64xf32>
    tpu.vector_store %arg14[%215, %c0_69, %c0_70], %218 {strides = array<i32>} : memref<8x8x64xf32, #tpu.memory_space<vmem>>, vector<1x8x64xf32>,
    %c4_i32 = arith.constant 4 : i32
    %c7_i32_71 = arith.constant 7 : i32
    %219 = arith.subi %c7_i32_71, %c4_i32 : i32
    %cst_72 = arith.constant dense<0.000000e+00> : vector<8x256xf32>
    %220 = tpu.matmul %195, %9, %cst_72 {dimension_numbers = #tpu.dot_dimension_numbers<[1], [0], [0], [1], [0, 0, 1, 1], [], []>} : vector<8x64xf32>, vector<64x256xf32>, vector<8x256xf32> -> vector<8x256xf32>
    %cst_73 = arith.constant dense<0.000000e+00> : vector<8x256xf32>
    %221 = tpu.matmul %210, %10, %cst_73 {dimension_numbers = #tpu.dot_dimension_numbers<[1], [0], [0], [1], [0, 0, 1, 1], [], []>} : vector<8x64xf32>, vector<64x256xf32>, vector<8x256xf32> -> vector<8x256xf32>
    %222 = arith.index_cast %c4_i32 : i32 to index
    %c0_74 = arith.constant 0 : index
    %c0_75 = arith.constant 0 : index
    %223 = vector.load %arg12[%222, %c0_74, %c0_75] : memref<8x8x512xf32, #tpu.memory_space<vmem>>, vector<1x8x512xf32>
    %224 = vector.shape_cast %223 : vector<1x8x512xf32> to vector<8x512xf32>
    %225 = vector.extract_strided_slice %224 {offsets = [0, 0], sizes = [8, 256], strides = [1, 1]} : vector<8x512xf32> to vector<8x256xf32>
    %226 = arith.addf %225, %220 : vector<8x256xf32>
    %227 = arith.index_cast %219 : i32 to index
    %c0_76 = arith.constant 0 : index
    %c0_77 = arith.constant 0 : index
    %228 = vector.load %arg12[%227, %c0_76, %c0_77] : memref<8x8x512xf32, #tpu.memory_space<vmem>>, vector<1x8x512xf32>
    %229 = vector.shape_cast %228 : vector<1x8x512xf32> to vector<8x512xf32>
    %230 = vector.extract_strided_slice %229 {offsets = [0, 256], sizes = [8, 256], strides = [1, 1]} : vector<8x512xf32> to vector<8x256xf32>
    %231 = arith.addf %230, %221 : vector<8x256xf32>
    %232 = arith.negf %226 : vector<8x256xf32>
    %233 = math.exp %232 : vector<8x256xf32>
    %cst_78 = arith.constant 1.000000e+00 : f32
    %234 = vector.broadcast %cst_78 : f32 to vector<8x256xf32>
    %235 = arith.addf %234, %233 : vector<8x256xf32>
    %236 = arith.divf %234, %235 : vector<8x256xf32>
    %237 = vector.extract_strided_slice %236 {offsets = [0, 0], sizes = [8, 64], strides = [1, 1]} : vector<8x256xf32> to vector<8x64xf32>
    %238 = vector.extract_strided_slice %236 {offsets = [0, 64], sizes = [8, 64], strides = [1, 1]} : vector<8x256xf32> to vector<8x64xf32>
    %239 = vector.extract_strided_slice %236 {offsets = [0, 192], sizes = [8, 64], strides = [1, 1]} : vector<8x256xf32> to vector<8x64xf32>
    %240 = vector.extract_strided_slice %226 {offsets = [0, 128], sizes = [8, 64], strides = [1, 1]} : vector<8x256xf32> to vector<8x64xf32>
    %241 = math.tanh %240 : vector<8x64xf32>
    %242 = arith.mulf %238, %193 : vector<8x64xf32>
    %243 = arith.mulf %237, %241 : vector<8x64xf32>
    %244 = arith.addf %242, %243 : vector<8x64xf32>
    %245 = math.tanh %244 : vector<8x64xf32>
    %246 = arith.mulf %239, %245 : vector<8x64xf32>
    %247 = arith.negf %231 : vector<8x256xf32>
    %248 = math.exp %247 : vector<8x256xf32>
    %cst_79 = arith.constant 1.000000e+00 : f32
    %249 = vector.broadcast %cst_79 : f32 to vector<8x256xf32>
    %250 = arith.addf %249, %248 : vector<8x256xf32>
    %251 = arith.divf %249, %250 : vector<8x256xf32>
    %252 = vector.extract_strided_slice %251 {offsets = [0, 0], sizes = [8, 64], strides = [1, 1]} : vector<8x256xf32> to vector<8x64xf32>
    %253 = vector.extract_strided_slice %251 {offsets = [0, 64], sizes = [8, 64], strides = [1, 1]} : vector<8x256xf32> to vector<8x64xf32>
    %254 = vector.extract_strided_slice %251 {offsets = [0, 192], sizes = [8, 64], strides = [1, 1]} : vector<8x256xf32> to vector<8x64xf32>
    %255 = vector.extract_strided_slice %231 {offsets = [0, 128], sizes = [8, 64], strides = [1, 1]} : vector<8x256xf32> to vector<8x64xf32>
    %256 = math.tanh %255 : vector<8x64xf32>
    %257 = arith.mulf %253, %208 : vector<8x64xf32>
    %258 = arith.mulf %252, %256 : vector<8x64xf32>
    %259 = arith.addf %257, %258 : vector<8x64xf32>
    %260 = math.tanh %259 : vector<8x64xf32>
    %261 = arith.mulf %254, %260 : vector<8x64xf32>
    %262 = arith.index_cast %c4_i32 : i32 to index
    %c0_80 = arith.constant 0 : index
    %c0_81 = arith.constant 0 : index
    %263 = vector.load %arg13[%262, %c0_80, %c0_81] : memref<8x8x64xf32, #tpu.memory_space<vmem>>, vector<1x8x64xf32>
    %264 = vector.shape_cast %263 : vector<1x8x64xf32> to vector<8x64xf32>
    %265 = vector.shape_cast %246 : vector<8x64xf32> to vector<1x8x64xf32>
    tpu.vector_store %arg13[%262, %c0_80, %c0_81], %265 {strides = array<i32>} : memref<8x8x64xf32, #tpu.memory_space<vmem>>, vector<1x8x64xf32>,
    %266 = arith.index_cast %219 : i32 to index
    %c0_82 = arith.constant 0 : index
    %c0_83 = arith.constant 0 : index
    %267 = vector.load %arg14[%266, %c0_82, %c0_83] : memref<8x8x64xf32, #tpu.memory_space<vmem>>, vector<1x8x64xf32>
    %268 = vector.shape_cast %267 : vector<1x8x64xf32> to vector<8x64xf32>
    %269 = vector.shape_cast %261 : vector<8x64xf32> to vector<1x8x64xf32>
    tpu.vector_store %arg14[%266, %c0_82, %c0_83], %269 {strides = array<i32>} : memref<8x8x64xf32, #tpu.memory_space<vmem>>, vector<1x8x64xf32>,
    %c5_i32 = arith.constant 5 : i32
    %c7_i32_84 = arith.constant 7 : i32
    %270 = arith.subi %c7_i32_84, %c5_i32 : i32
    %cst_85 = arith.constant dense<0.000000e+00> : vector<8x256xf32>
    %271 = tpu.matmul %246, %9, %cst_85 {dimension_numbers = #tpu.dot_dimension_numbers<[1], [0], [0], [1], [0, 0, 1, 1], [], []>} : vector<8x64xf32>, vector<64x256xf32>, vector<8x256xf32> -> vector<8x256xf32>
    %cst_86 = arith.constant dense<0.000000e+00> : vector<8x256xf32>
    %272 = tpu.matmul %261, %10, %cst_86 {dimension_numbers = #tpu.dot_dimension_numbers<[1], [0], [0], [1], [0, 0, 1, 1], [], []>} : vector<8x64xf32>, vector<64x256xf32>, vector<8x256xf32> -> vector<8x256xf32>
    %273 = arith.index_cast %c5_i32 : i32 to index
    %c0_87 = arith.constant 0 : index
    %c0_88 = arith.constant 0 : index
    %274 = vector.load %arg12[%273, %c0_87, %c0_88] : memref<8x8x512xf32, #tpu.memory_space<vmem>>, vector<1x8x512xf32>
    %275 = vector.shape_cast %274 : vector<1x8x512xf32> to vector<8x512xf32>
    %276 = vector.extract_strided_slice %275 {offsets = [0, 0], sizes = [8, 256], strides = [1, 1]} : vector<8x512xf32> to vector<8x256xf32>
    %277 = arith.addf %276, %271 : vector<8x256xf32>
    %278 = arith.index_cast %270 : i32 to index
    %c0_89 = arith.constant 0 : index
    %c0_90 = arith.constant 0 : index
    %279 = vector.load %arg12[%278, %c0_89, %c0_90] : memref<8x8x512xf32, #tpu.memory_space<vmem>>, vector<1x8x512xf32>
    %280 = vector.shape_cast %279 : vector<1x8x512xf32> to vector<8x512xf32>
    %281 = vector.extract_strided_slice %280 {offsets = [0, 256], sizes = [8, 256], strides = [1, 1]} : vector<8x512xf32> to vector<8x256xf32>
    %282 = arith.addf %281, %272 : vector<8x256xf32>
    %283 = arith.negf %277 : vector<8x256xf32>
    %284 = math.exp %283 : vector<8x256xf32>
    %cst_91 = arith.constant 1.000000e+00 : f32
    %285 = vector.broadcast %cst_91 : f32 to vector<8x256xf32>
    %286 = arith.addf %285, %284 : vector<8x256xf32>
    %287 = arith.divf %285, %286 : vector<8x256xf32>
    %288 = vector.extract_strided_slice %287 {offsets = [0, 0], sizes = [8, 64], strides = [1, 1]} : vector<8x256xf32> to vector<8x64xf32>
    %289 = vector.extract_strided_slice %287 {offsets = [0, 64], sizes = [8, 64], strides = [1, 1]} : vector<8x256xf32> to vector<8x64xf32>
    %290 = vector.extract_strided_slice %287 {offsets = [0, 192], sizes = [8, 64], strides = [1, 1]} : vector<8x256xf32> to vector<8x64xf32>
    %291 = vector.extract_strided_slice %277 {offsets = [0, 128], sizes = [8, 64], strides = [1, 1]} : vector<8x256xf32> to vector<8x64xf32>
    %292 = math.tanh %291 : vector<8x64xf32>
    %293 = arith.mulf %289, %244 : vector<8x64xf32>
    %294 = arith.mulf %288, %292 : vector<8x64xf32>
    %295 = arith.addf %293, %294 : vector<8x64xf32>
    %296 = math.tanh %295 : vector<8x64xf32>
    %297 = arith.mulf %290, %296 : vector<8x64xf32>
    %298 = arith.negf %282 : vector<8x256xf32>
    %299 = math.exp %298 : vector<8x256xf32>
    %cst_92 = arith.constant 1.000000e+00 : f32
    %300 = vector.broadcast %cst_92 : f32 to vector<8x256xf32>
    %301 = arith.addf %300, %299 : vector<8x256xf32>
    %302 = arith.divf %300, %301 : vector<8x256xf32>
    %303 = vector.extract_strided_slice %302 {offsets = [0, 0], sizes = [8, 64], strides = [1, 1]} : vector<8x256xf32> to vector<8x64xf32>
    %304 = vector.extract_strided_slice %302 {offsets = [0, 64], sizes = [8, 64], strides = [1, 1]} : vector<8x256xf32> to vector<8x64xf32>
    %305 = vector.extract_strided_slice %302 {offsets = [0, 192], sizes = [8, 64], strides = [1, 1]} : vector<8x256xf32> to vector<8x64xf32>
    %306 = vector.extract_strided_slice %282 {offsets = [0, 128], sizes = [8, 64], strides = [1, 1]} : vector<8x256xf32> to vector<8x64xf32>
    %307 = math.tanh %306 : vector<8x64xf32>
    %308 = arith.mulf %304, %259 : vector<8x64xf32>
    %309 = arith.mulf %303, %307 : vector<8x64xf32>
    %310 = arith.addf %308, %309 : vector<8x64xf32>
    %311 = math.tanh %310 : vector<8x64xf32>
    %312 = arith.mulf %305, %311 : vector<8x64xf32>
    %313 = arith.index_cast %c5_i32 : i32 to index
    %c0_93 = arith.constant 0 : index
    %c0_94 = arith.constant 0 : index
    %314 = vector.load %arg13[%313, %c0_93, %c0_94] : memref<8x8x64xf32, #tpu.memory_space<vmem>>, vector<1x8x64xf32>
    %315 = vector.shape_cast %314 : vector<1x8x64xf32> to vector<8x64xf32>
    %316 = vector.shape_cast %297 : vector<8x64xf32> to vector<1x8x64xf32>
    tpu.vector_store %arg13[%313, %c0_93, %c0_94], %316 {strides = array<i32>} : memref<8x8x64xf32, #tpu.memory_space<vmem>>, vector<1x8x64xf32>,
    %317 = arith.index_cast %270 : i32 to index
    %c0_95 = arith.constant 0 : index
    %c0_96 = arith.constant 0 : index
    %318 = vector.load %arg14[%317, %c0_95, %c0_96] : memref<8x8x64xf32, #tpu.memory_space<vmem>>, vector<1x8x64xf32>
    %319 = vector.shape_cast %318 : vector<1x8x64xf32> to vector<8x64xf32>
    %320 = vector.shape_cast %312 : vector<8x64xf32> to vector<1x8x64xf32>
    tpu.vector_store %arg14[%317, %c0_95, %c0_96], %320 {strides = array<i32>} : memref<8x8x64xf32, #tpu.memory_space<vmem>>, vector<1x8x64xf32>,
    %c6_i32 = arith.constant 6 : i32
    %c7_i32_97 = arith.constant 7 : i32
    %321 = arith.subi %c7_i32_97, %c6_i32 : i32
    %cst_98 = arith.constant dense<0.000000e+00> : vector<8x256xf32>
    %322 = tpu.matmul %297, %9, %cst_98 {dimension_numbers = #tpu.dot_dimension_numbers<[1], [0], [0], [1], [0, 0, 1, 1], [], []>} : vector<8x64xf32>, vector<64x256xf32>, vector<8x256xf32> -> vector<8x256xf32>
    %cst_99 = arith.constant dense<0.000000e+00> : vector<8x256xf32>
    %323 = tpu.matmul %312, %10, %cst_99 {dimension_numbers = #tpu.dot_dimension_numbers<[1], [0], [0], [1], [0, 0, 1, 1], [], []>} : vector<8x64xf32>, vector<64x256xf32>, vector<8x256xf32> -> vector<8x256xf32>
    %324 = arith.index_cast %c6_i32 : i32 to index
    %c0_100 = arith.constant 0 : index
    %c0_101 = arith.constant 0 : index
    %325 = vector.load %arg12[%324, %c0_100, %c0_101] : memref<8x8x512xf32, #tpu.memory_space<vmem>>, vector<1x8x512xf32>
    %326 = vector.shape_cast %325 : vector<1x8x512xf32> to vector<8x512xf32>
    %327 = vector.extract_strided_slice %326 {offsets = [0, 0], sizes = [8, 256], strides = [1, 1]} : vector<8x512xf32> to vector<8x256xf32>
    %328 = arith.addf %327, %322 : vector<8x256xf32>
    %329 = arith.index_cast %321 : i32 to index
    %c0_102 = arith.constant 0 : index
    %c0_103 = arith.constant 0 : index
    %330 = vector.load %arg12[%329, %c0_102, %c0_103] : memref<8x8x512xf32, #tpu.memory_space<vmem>>, vector<1x8x512xf32>
    %331 = vector.shape_cast %330 : vector<1x8x512xf32> to vector<8x512xf32>
    %332 = vector.extract_strided_slice %331 {offsets = [0, 256], sizes = [8, 256], strides = [1, 1]} : vector<8x512xf32> to vector<8x256xf32>
    %333 = arith.addf %332, %323 : vector<8x256xf32>
    %334 = arith.negf %328 : vector<8x256xf32>
    %335 = math.exp %334 : vector<8x256xf32>
    %cst_104 = arith.constant 1.000000e+00 : f32
    %336 = vector.broadcast %cst_104 : f32 to vector<8x256xf32>
    %337 = arith.addf %336, %335 : vector<8x256xf32>
    %338 = arith.divf %336, %337 : vector<8x256xf32>
    %339 = vector.extract_strided_slice %338 {offsets = [0, 0], sizes = [8, 64], strides = [1, 1]} : vector<8x256xf32> to vector<8x64xf32>
    %340 = vector.extract_strided_slice %338 {offsets = [0, 64], sizes = [8, 64], strides = [1, 1]} : vector<8x256xf32> to vector<8x64xf32>
    %341 = vector.extract_strided_slice %338 {offsets = [0, 192], sizes = [8, 64], strides = [1, 1]} : vector<8x256xf32> to vector<8x64xf32>
    %342 = vector.extract_strided_slice %328 {offsets = [0, 128], sizes = [8, 64], strides = [1, 1]} : vector<8x256xf32> to vector<8x64xf32>
    %343 = math.tanh %342 : vector<8x64xf32>
    %344 = arith.mulf %340, %295 : vector<8x64xf32>
    %345 = arith.mulf %339, %343 : vector<8x64xf32>
    %346 = arith.addf %344, %345 : vector<8x64xf32>
    %347 = math.tanh %346 : vector<8x64xf32>
    %348 = arith.mulf %341, %347 : vector<8x64xf32>
    %349 = arith.negf %333 : vector<8x256xf32>
    %350 = math.exp %349 : vector<8x256xf32>
    %cst_105 = arith.constant 1.000000e+00 : f32
    %351 = vector.broadcast %cst_105 : f32 to vector<8x256xf32>
    %352 = arith.addf %351, %350 : vector<8x256xf32>
    %353 = arith.divf %351, %352 : vector<8x256xf32>
    %354 = vector.extract_strided_slice %353 {offsets = [0, 0], sizes = [8, 64], strides = [1, 1]} : vector<8x256xf32> to vector<8x64xf32>
    %355 = vector.extract_strided_slice %353 {offsets = [0, 64], sizes = [8, 64], strides = [1, 1]} : vector<8x256xf32> to vector<8x64xf32>
    %356 = vector.extract_strided_slice %353 {offsets = [0, 192], sizes = [8, 64], strides = [1, 1]} : vector<8x256xf32> to vector<8x64xf32>
    %357 = vector.extract_strided_slice %333 {offsets = [0, 128], sizes = [8, 64], strides = [1, 1]} : vector<8x256xf32> to vector<8x64xf32>
    %358 = math.tanh %357 : vector<8x64xf32>
    %359 = arith.mulf %355, %310 : vector<8x64xf32>
    %360 = arith.mulf %354, %358 : vector<8x64xf32>
    %361 = arith.addf %359, %360 : vector<8x64xf32>
    %362 = math.tanh %361 : vector<8x64xf32>
    %363 = arith.mulf %356, %362 : vector<8x64xf32>
    %364 = arith.index_cast %c6_i32 : i32 to index
    %c0_106 = arith.constant 0 : index
    %c0_107 = arith.constant 0 : index
    %365 = vector.load %arg13[%364, %c0_106, %c0_107] : memref<8x8x64xf32, #tpu.memory_space<vmem>>, vector<1x8x64xf32>
    %366 = vector.shape_cast %365 : vector<1x8x64xf32> to vector<8x64xf32>
    %367 = vector.shape_cast %348 : vector<8x64xf32> to vector<1x8x64xf32>
    tpu.vector_store %arg13[%364, %c0_106, %c0_107], %367 {strides = array<i32>} : memref<8x8x64xf32, #tpu.memory_space<vmem>>, vector<1x8x64xf32>,
    %368 = arith.index_cast %321 : i32 to index
    %c0_108 = arith.constant 0 : index
    %c0_109 = arith.constant 0 : index
    %369 = vector.load %arg14[%368, %c0_108, %c0_109] : memref<8x8x64xf32, #tpu.memory_space<vmem>>, vector<1x8x64xf32>
    %370 = vector.shape_cast %369 : vector<1x8x64xf32> to vector<8x64xf32>
    %371 = vector.shape_cast %363 : vector<8x64xf32> to vector<1x8x64xf32>
    tpu.vector_store %arg14[%368, %c0_108, %c0_109], %371 {strides = array<i32>} : memref<8x8x64xf32, #tpu.memory_space<vmem>>, vector<1x8x64xf32>,
    %c7_i32_110 = arith.constant 7 : i32
    %c7_i32_111 = arith.constant 7 : i32
    %372 = arith.subi %c7_i32_111, %c7_i32_110 : i32
    %cst_112 = arith.constant dense<0.000000e+00> : vector<8x256xf32>
    %373 = tpu.matmul %348, %9, %cst_112 {dimension_numbers = #tpu.dot_dimension_numbers<[1], [0], [0], [1], [0, 0, 1, 1], [], []>} : vector<8x64xf32>, vector<64x256xf32>, vector<8x256xf32> -> vector<8x256xf32>
    %cst_113 = arith.constant dense<0.000000e+00> : vector<8x256xf32>
    %374 = tpu.matmul %363, %10, %cst_113 {dimension_numbers = #tpu.dot_dimension_numbers<[1], [0], [0], [1], [0, 0, 1, 1], [], []>} : vector<8x64xf32>, vector<64x256xf32>, vector<8x256xf32> -> vector<8x256xf32>
    %375 = arith.index_cast %c7_i32_110 : i32 to index
    %c0_114 = arith.constant 0 : index
    %c0_115 = arith.constant 0 : index
    %376 = vector.load %arg12[%375, %c0_114, %c0_115] : memref<8x8x512xf32, #tpu.memory_space<vmem>>, vector<1x8x512xf32>
    %377 = vector.shape_cast %376 : vector<1x8x512xf32> to vector<8x512xf32>
    %378 = vector.extract_strided_slice %377 {offsets = [0, 0], sizes = [8, 256], strides = [1, 1]} : vector<8x512xf32> to vector<8x256xf32>
    %379 = arith.addf %378, %373 : vector<8x256xf32>
    %380 = arith.index_cast %372 : i32 to index
    %c0_116 = arith.constant 0 : index
    %c0_117 = arith.constant 0 : index
    %381 = vector.load %arg12[%380, %c0_116, %c0_117] : memref<8x8x512xf32, #tpu.memory_space<vmem>>, vector<1x8x512xf32>
    %382 = vector.shape_cast %381 : vector<1x8x512xf32> to vector<8x512xf32>
    %383 = vector.extract_strided_slice %382 {offsets = [0, 256], sizes = [8, 256], strides = [1, 1]} : vector<8x512xf32> to vector<8x256xf32>
    %384 = arith.addf %383, %374 : vector<8x256xf32>
    %385 = arith.negf %379 : vector<8x256xf32>
    %386 = math.exp %385 : vector<8x256xf32>
    %cst_118 = arith.constant 1.000000e+00 : f32
    %387 = vector.broadcast %cst_118 : f32 to vector<8x256xf32>
    %388 = arith.addf %387, %386 : vector<8x256xf32>
    %389 = arith.divf %387, %388 : vector<8x256xf32>
    %390 = vector.extract_strided_slice %389 {offsets = [0, 0], sizes = [8, 64], strides = [1, 1]} : vector<8x256xf32> to vector<8x64xf32>
    %391 = vector.extract_strided_slice %389 {offsets = [0, 64], sizes = [8, 64], strides = [1, 1]} : vector<8x256xf32> to vector<8x64xf32>
    %392 = vector.extract_strided_slice %389 {offsets = [0, 192], sizes = [8, 64], strides = [1, 1]} : vector<8x256xf32> to vector<8x64xf32>
    %393 = vector.extract_strided_slice %379 {offsets = [0, 128], sizes = [8, 64], strides = [1, 1]} : vector<8x256xf32> to vector<8x64xf32>
    %394 = math.tanh %393 : vector<8x64xf32>
    %395 = arith.mulf %391, %346 : vector<8x64xf32>
    %396 = arith.mulf %390, %394 : vector<8x64xf32>
    %397 = arith.addf %395, %396 : vector<8x64xf32>
    %398 = math.tanh %397 : vector<8x64xf32>
    %399 = arith.mulf %392, %398 : vector<8x64xf32>
    %400 = arith.negf %384 : vector<8x256xf32>
    %401 = math.exp %400 : vector<8x256xf32>
    %cst_119 = arith.constant 1.000000e+00 : f32
    %402 = vector.broadcast %cst_119 : f32 to vector<8x256xf32>
    %403 = arith.addf %402, %401 : vector<8x256xf32>
    %404 = arith.divf %402, %403 : vector<8x256xf32>
    %405 = vector.extract_strided_slice %404 {offsets = [0, 0], sizes = [8, 64], strides = [1, 1]} : vector<8x256xf32> to vector<8x64xf32>
    %406 = vector.extract_strided_slice %404 {offsets = [0, 64], sizes = [8, 64], strides = [1, 1]} : vector<8x256xf32> to vector<8x64xf32>
    %407 = vector.extract_strided_slice %404 {offsets = [0, 192], sizes = [8, 64], strides = [1, 1]} : vector<8x256xf32> to vector<8x64xf32>
    %408 = vector.extract_strided_slice %384 {offsets = [0, 128], sizes = [8, 64], strides = [1, 1]} : vector<8x256xf32> to vector<8x64xf32>
    %409 = math.tanh %408 : vector<8x64xf32>
    %410 = arith.mulf %406, %361 : vector<8x64xf32>
    %411 = arith.mulf %405, %409 : vector<8x64xf32>
    %412 = arith.addf %410, %411 : vector<8x64xf32>
    %413 = math.tanh %412 : vector<8x64xf32>
    %414 = arith.mulf %407, %413 : vector<8x64xf32>
    %415 = arith.index_cast %c7_i32_110 : i32 to index
    %c0_120 = arith.constant 0 : index
    %c0_121 = arith.constant 0 : index
    %416 = vector.load %arg13[%415, %c0_120, %c0_121] : memref<8x8x64xf32, #tpu.memory_space<vmem>>, vector<1x8x64xf32>
    %417 = vector.shape_cast %416 : vector<1x8x64xf32> to vector<8x64xf32>
    %418 = vector.shape_cast %399 : vector<8x64xf32> to vector<1x8x64xf32>
    tpu.vector_store %arg13[%415, %c0_120, %c0_121], %418 {strides = array<i32>} : memref<8x8x64xf32, #tpu.memory_space<vmem>>, vector<1x8x64xf32>,
    %419 = arith.index_cast %372 : i32 to index
    %c0_122 = arith.constant 0 : index
    %c0_123 = arith.constant 0 : index
    %420 = vector.load %arg14[%419, %c0_122, %c0_123] : memref<8x8x64xf32, #tpu.memory_space<vmem>>, vector<1x8x64xf32>
    %421 = vector.shape_cast %420 : vector<1x8x64xf32> to vector<8x64xf32>
    %422 = vector.shape_cast %414 : vector<8x64xf32> to vector<1x8x64xf32>
    tpu.vector_store %arg14[%419, %c0_122, %c0_123], %422 {strides = array<i32>} : memref<8x8x64xf32, #tpu.memory_space<vmem>>, vector<1x8x64xf32>,
    %c8_i32 = arith.constant 8 : i32
    %c0_124 = arith.constant 0 : index
    %c0_125 = arith.constant 0 : index
    %c0_126 = arith.constant 0 : index
    %423 = vector.load %arg13[%c0_124, %c0_125, %c0_126] : memref<8x8x64xf32, #tpu.memory_space<vmem>>, vector<8x8x64xf32>
    %424 = vector.shape_cast %423 : vector<8x8x64xf32> to vector<64x64xf32>
    %c0_127 = arith.constant 0 : index
    %c0_128 = arith.constant 0 : index
    %425 = vector.load %arg6[%c0_127, %c0_128] : memref<64x2xf32, #tpu.memory_space<vmem>>, vector<64x2xf32>
    %cst_129 = arith.constant dense<0.000000e+00> : vector<64x2xf32>
    %426 = tpu.matmul %424, %425, %cst_129 {dimension_numbers = #tpu.dot_dimension_numbers<[1], [0], [0], [1], [0, 0, 1, 1], [], []>} : vector<64x64xf32>, vector<64x2xf32>, vector<64x2xf32> -> vector<64x2xf32>
    %c0_130 = arith.constant 0 : index
    %c0_131 = arith.constant 0 : index
    %c0_132 = arith.constant 0 : index
    %427 = vector.load %arg14[%c0_130, %c0_131, %c0_132] : memref<8x8x64xf32, #tpu.memory_space<vmem>>, vector<8x8x64xf32>
    %428 = vector.shape_cast %427 : vector<8x8x64xf32> to vector<64x64xf32>
    %c0_133 = arith.constant 0 : index
    %c0_134 = arith.constant 0 : index
    %429 = vector.load %arg7[%c0_133, %c0_134] : memref<64x2xf32, #tpu.memory_space<vmem>>, vector<64x2xf32>
    %cst_135 = arith.constant dense<0.000000e+00> : vector<64x2xf32>
    %430 = tpu.matmul %428, %429, %cst_135 {dimension_numbers = #tpu.dot_dimension_numbers<[1], [0], [0], [1], [0, 0, 1, 1], [], []>} : vector<64x64xf32>, vector<64x2xf32>, vector<64x2xf32> -> vector<64x2xf32>
    %431 = arith.addf %426, %430 : vector<64x2xf32>
    %c0_136 = arith.constant 0 : index
    %c0_137 = arith.constant 0 : index
    %432 = vector.load %arg8[%c0_136, %c0_137] : memref<1x2xf32, #tpu.memory_space<vmem>>, vector<1x2xf32>
    %433 = vector.broadcast %432 : vector<1x2xf32> to vector<64x2xf32>
    %434 = arith.addf %431, %433 : vector<64x2xf32>
    %435 = vector.shape_cast %434 : vector<64x2xf32> to vector<8x8x2xf32>
    %c0_138 = arith.constant 0 : index
    %c0_139 = arith.constant 0 : index
    %c0_140 = arith.constant 0 : index
    %436 = vector.load %arg11[%c0_138, %c0_139, %c0_140] : memref<8x8x2xf32, #tpu.memory_space<vmem>>, vector<8x8x2xf32>
    tpu.vector_store %arg11[%c0_138, %c0_139, %c0_140], %435 {strides = array<i32>} : memref<8x8x2xf32, #tpu.memory_space<vmem>>, vector<8x8x2xf32>,
    return
  }
  func.func @transform_0(%arg0: i32) -> (i32, i32, i32) {
    %c0_i32 = arith.constant 0 : i32
    %c0_i32_0 = arith.constant 0 : i32
    %c0_i32_1 = arith.constant 0 : i32
    return %c0_i32, %arg0, %c0_i32_0 : i32, i32, i32
  }
  func.func @transform_1(%arg0: i32) -> (i32, i32) {
    %c0_i32 = arith.constant 0 : i32
    %c0_i32_0 = arith.constant 0 : i32
    %c0_i32_1 = arith.constant 0 : i32
    return %c0_i32, %c0_i32_0 : i32, i32
  }
  func.func @transform_2(%arg0: i32) -> (i32, i32) {
    %c0_i32 = arith.constant 0 : i32
    %c0_i32_0 = arith.constant 0 : i32
    %c0_i32_1 = arith.constant 0 : i32
    return %c0_i32, %c0_i32_0 : i32, i32
  }
  func.func @transform_3(%arg0: i32) -> (i32, i32) {
    %c0_i32 = arith.constant 0 : i32
    %c0_i32_0 = arith.constant 0 : i32
    %c0_i32_1 = arith.constant 0 : i32
    return %c0_i32, %c0_i32_0 : i32, i32
  }
  func.func @transform_4(%arg0: i32) -> (i32, i32) {
    %c0_i32 = arith.constant 0 : i32
    %c0_i32_0 = arith.constant 0 : i32
    %c0_i32_1 = arith.constant 0 : i32
    return %c0_i32, %c0_i32_0 : i32, i32
  }
  func.func @transform_5(%arg0: i32) -> (i32, i32) {
    %c0_i32 = arith.constant 0 : i32
    %c0_i32_0 = arith.constant 0 : i32
    %c0_i32_1 = arith.constant 0 : i32
    return %c0_i32, %c0_i32_0 : i32, i32
  }
  func.func @transform_6(%arg0: i32) -> (i32, i32) {
    %c0_i32 = arith.constant 0 : i32
    %c0_i32_0 = arith.constant 0 : i32
    %c0_i32_1 = arith.constant 0 : i32
    return %c0_i32, %c0_i32_0 : i32, i32
  }
  func.func @transform_7(%arg0: i32) -> (i32, i32) {
    %c0_i32 = arith.constant 0 : i32
    %c0_i32_0 = arith.constant 0 : i32
    %c0_i32_1 = arith.constant 0 : i32
    return %c0_i32, %c0_i32_0 : i32, i32
  }
  func.func @transform_8(%arg0: i32) -> (i32, i32) {
    %c0_i32 = arith.constant 0 : i32
    %c0_i32_0 = arith.constant 0 : i32
    return %arg0, %c0_i32 : i32, i32
  }
  func.func @transform_9(%arg0: i32) -> (i32, i32) {
    %c0_i32 = arith.constant 0 : i32
    %c0_i32_0 = arith.constant 0 : i32
    return %arg0, %c0_i32 : i32, i32
  }
  func.func @transform_10(%arg0: i32) -> (i32, i32, i32) {
    %c0_i32 = arith.constant 0 : i32
    %c0_i32_0 = arith.constant 0 : i32
    %c0_i32_1 = arith.constant 0 : i32
    return %c0_i32, %arg0, %c0_i32_0 : i32, i32, i32
  }
}

</mosaic_0001>

<bundles_post_ra>
// kernel: tpu_custom_call.1
= control target key start
LH: loop header
LB: loop body
LE: loop exit
PB: predicated region body
PF: predicated region fallthrough
CT: control target
= control target key end

     0   :  { %15 = vsyncpa [#allocation6], 0  ;;  %s3964_s0 = inlined_call_operand.hbm [shape: f32[8,8,64], index: 0, kind: input, shape index: {}]   ;;  %s3965_s1 = inlined_call_operand.hbm [shape: f32[64,512], index: 1, kind: input, shape index: {}]   ;;  %s3966_s2 = inlined_call_operand.hbm [shape: f32[1,512], index: 2, kind: input, shape index: {}]   ;;  %s3967_s3 = inlined_call_operand.vmem [shape: f32[64,256], index: 3, kind: input, shape index: {}]   ;;  %s3968_s4 = inlined_call_operand.hbm [shape: f32[64,256], index: 4, kind: input, shape index: {}]   ;;  %s3969_s5 = inlined_call_operand.vmem [shape: f32[64,2], index: 5, kind: input, shape index: {}]   ;;  %s3970_s6 = inlined_call_operand.vmem [shape: f32[64,2], index: 6, kind: input, shape index: {}]   ;;  %s3971_s7 = inlined_call_operand.hbm [shape: f32[1,2], index: 7, kind: input, shape index: {}]   ;;  %s3972_s8 = inlined_call_operand.vmem [shape: f32[8,128], index: 8, kind: input, shape index: {}]   ;;  %s3973_s9 = inlined_call_operand.vmem [shape: f32[8,128], index: 9, kind: input, shape index: {}]   ;;  %s3974_s10 = inlined_call_operand.vmem [shape: f32[8,8,2], index: 10, kind: output, shape index: {}]  }
   0x1   :  { %16 = vsyncpa [#allocation8], 0 }
   0x2   :  { %17 = vsyncpa [#allocation11], 0  ;;  %s3003_s13 = smov [#allocation7]  }
   0x3   :  { %s35_s14 = sshll.u32 %s3003_s13, 4  ;;  %s36_s14 = int_to_ptr.vmem [resolvable:$true] %s35_s14 }
   0x4   :  { %s2905_s15 = scalar_lea.vmem %s36_s14, 4096  ;;  %p2910_p1 = scmp.lt.s32.totalorder %s36_s14, %s36_s14 }
   0x5   :  { %p2906_p0 = scmp.ne.s32.totalorder %s36_s14, %s2905_s15  ;;  %p2911_p2 = scmp.lt.s32.totalorder %s2905_s15, %s2905_s15 }
   0x7   :  { %p2912_p3 = por %p2911_p2, %p2910_p1 }
   0x9   :  { %p2913_p4 = pnand %p2912_p3, %p2906_p0 }
   0xb   :  { %2916 = shalt.err (!%p2913_p4)
}
   0xc   :  { %s3004_s16 = smov 512   ;;  %s3005_s17 = smov 32  }
   0xd   :  { %41 = dma.hbm_to_vmem [thread:$0]  %s3965_s1, 4096, %s36_s14, [#allocation8], %s3004_s16, %s3004_s16, %s3005_s17  }
   0xe   :  { %s3006_s20 = smov [#allocation10]  }
   0xf   :  { %s59_s21 = sshll.u32 %s3006_s20, 4  ;;  %s60_s21 = int_to_ptr.vmem [resolvable:$true] %s59_s21 }
  0x10   :  { %s2925_s22 = scalar_lea.vmem %s60_s21, 2048  ;;  %p2930_p6 = scmp.lt.s32.totalorder %s60_s21, %s60_s21 }
  0x11   :  { %p2926_p5 = scmp.ne.s32.totalorder %s60_s21, %s2925_s22  ;;  %p2931_p7 = scmp.lt.s32.totalorder %s2925_s22, %s2925_s22 }
  0x13   :  { %p2932_p8 = por %p2931_p7, %p2930_p6 }
  0x15   :  { %p2933_p9 = pnand %p2932_p8, %p2926_p5 }
  0x17   :  { %2936 = shalt.err (!%p2933_p9)
}
  0x18   :  { %s3007_s23 = smov 256   ;;  %s3008_s24 = smov 16  }
  0x19   :  { %65 = dma.hbm_to_vmem [thread:$0]  %s3968_s4, 2048, %s60_s21, [#allocation11], %s3007_s23, %s3007_s23, %s3008_s24  }
  0x1a   :  { %s3009_s27 = smov [#allocation5]  }
  0x1b   :  { %s23_s28 = sshll.u32 %s3009_s27, 4  ;;  %s24_s28 = int_to_ptr.vmem [resolvable:$true] %s23_s28 }
  0x1c   :  { %s2945_s1 = scalar_lea.vmem %s24_s28, 1024  ;;  %p2950_p11 = scmp.lt.s32.totalorder %s24_s28, %s24_s28 }
  0x1d   :  { %p2946_p10 = scmp.ne.s32.totalorder %s24_s28, %s2945_s1  ;;  %p2951_p12 = scmp.lt.s32.totalorder %s2945_s1, %s2945_s1 }
  0x1f   :  { %p2952_p13 = por %p2951_p12, %p2950_p11 }
  0x21   :  { %p2953_p0 = pnand %p2952_p13, %p2946_p10 }
  0x23   :  { %2956 = shalt.err (!%p2953_p0)
}
  0x24   :  { %s3010_s29 = smov 128   ;;  %s3011_s30 = smov 8  }
  0x25   :  { %29 = dma.hbm_to_vmem [thread:$0]  %s3964_s0, 1024, %s24_s28, [#allocation6], %s3010_s29, %s3010_s29, %s3011_s30  }
  0x26   :  { %s3012_s13 = smov [#allocation9]   ;;  %s3013_s4 = smov [#allocation12]  }
  0x27   :  { %s48_s14 = sshll.u32 %s3012_s13, 4  ;;  %s76_s15 = sshll.u32 %s3013_s4, 4  ;;  %s49_s14 = int_to_ptr.vmem [resolvable:$true] %s48_s14  ;;  %s77_s15 = int_to_ptr.vmem [resolvable:$true] %s76_s15 }
  0x28   :  { %s2965_s16 = scalar_lea.vmem %s49_s14, 64  ;;  %p2970_p2 = scmp.lt.s32.totalorder %s49_s14, %s49_s14 }
  0x29   :  { %p2966_p1 = scmp.ne.s32.totalorder %s49_s14, %s2965_s16  ;;  %p2971_p3 = scmp.lt.s32.totalorder %s2965_s16, %s2965_s16 }
  0x2b   :  { %p2972_p4 = por %p2971_p3, %p2970_p2 }
  0x2d   :  { %p2973_p5 = pnand %p2972_p4, %p2966_p1 }
  0x2f   :  { %2976 = shalt.err (!%p2973_p5)
}
  0x30   :  { %51 = dma.hbm_to_vmem [thread:$0]  %s3966_s2, 64, %s49_s14, [#allocation8]  }
  0x31   :  { %s2985_s19 = scalar_lea.vmem %s77_s15, 16  ;;  %s2989_s0 = scalar_lea.vmem %s77_s15, 32 }
  0x32   :  { %p2986_p6 = scmp.ne.s32.totalorder %s77_s15, %s2985_s19  ;;  %p2990_p7 = scmp.lt.s32.totalorder %s77_s15, %s77_s15 }
  0x33   :  { %p2991_p8 = scmp.lt.s32.totalorder %s2989_s0, %s2985_s19 }
  0x35   :  { %p2992_p9 = por %p2991_p8, %p2990_p7 }
  0x37   :  { %p2993_p10 = pnand %p2992_p9, %p2986_p6 }
  0x39   :  { %2996 = shalt.err (!%p2993_p10)
}
  0x3a   :  { %79 = dma.hbm_to_vmem [thread:$0]  %s3971_s7, 16, %s77_s15, [#allocation11]  }
  0x3b   :  { %2997 = dma.done.wait [#allocation6], 1024  }
  0x3c   :  { %2998 = vsyncadd [#allocation6], 4294966272 }
  0x3d   :  { %2999 = dma.done.wait [#allocation8], 4160  }
  0x3e   :  { %3000 = vsyncadd [#allocation8], 4294963136 }
  0x3f   :  { %3001 = dma.done.wait [#allocation11], 2064  }
  0x40   :  { %3002 = vsyncadd [#allocation11], 4294965232  ;;  %v3975_v0 = vmov 0.0   ;;  %v3091_v1 = vld [vmem:[%s3972_s8] sm:$0xff]  ;;  %v136_v2 = vld [vmem:[#allocation7 + $0xe8] sm:$0xff]  ;;  %s3015_s23 = smov 64  }
  0x41   :  { %250 = vmatprep.mubr.f32.mxu0 %v3975_v0  ;;  %363 = vmatprep.mubr.f32.mxu1 %v3975_v0  ;;  %v135_v3 = vld [vmem:[#allocation7 + $0xe0] sm:$0xff]  ;;  %v132_v4 = vld [vmem:[#allocation7 + $0xc8] sm:$0xff]  ;;  %v138_v19 = vld [vmem:[#allocation7 + $0xf8] sm:$0xff]  ;;  %vm161_vm0 = vcmask 523264   ;;  %vm2475_vm1 = vcmask 15360  }
  0x42   :  { %552 = vrot.lane.b32.xlu0 %v3091_v1, %s3015_s23  ;;  %202 = vmatprep.subr.mxu0 %v136_v2  ;;  %v131_v5 = vld [vmem:[#allocation7 + $0xc0] sm:$0xff]  ;;  %v128_v6 = vld [vmem:[#allocation7 + $0xa8] sm:$0xff]  ;;  %v3100_v20 = vld [vmem:[%s3967_s3 + $0x78] sm:$0xff] }
  0x43   :  { %203 = vmatpush1.msra.mxu0 %v135_v3  ;;  %v127_v7 = vld [vmem:[#allocation7 + $0xa0] sm:$0xff]  ;;  %v124_v8 = vld [vmem:[#allocation7 + $0x88] sm:$0xff]  ;;  %315 = vmatprep.subr.mxu1 %v138_v19  ;;  %v137_v21 = vld [vmem:[#allocation7 + $0xf0] sm:$0xff] }
  0x44   :  { %204 = vmatprep.subr.mxu0 %v132_v4  ;;  %v123_v9 = vld [vmem:[#allocation7 + $0x80] sm:$0xff]  ;;  %v120_v10 = vld [vmem:[#allocation7 + $0x68] sm:$0xff]  ;;  %v134_v22 = vld [vmem:[#allocation7 + $0xd8] sm:$0xff]  ;;  %316 = vmatpush1.msra.mxu1 %v137_v21 }
  0x45   :  { %205 = vmatpush1.msra.mxu0 %v131_v5  ;;  %v119_v11 = vld [vmem:[#allocation7 + $0x60] sm:$0xff]  ;;  %v116_v12 = vld [vmem:[#allocation7 + $0x48] sm:$0xff]  ;;  %v3105_v23 = vld [vmem:[%s3967_s3 + $0x70] sm:$0xff]  ;;  %317 = vmatprep.subr.mxu1 %v134_v22 }
  0x46   :  { %206 = vmatprep.subr.mxu0 %v128_v6  ;;  %v115_v13 = vld [vmem:[#allocation7 + $0x40] sm:$0xff]  ;;  %v112_v14 = vld [vmem:[#allocation7 + $0x28] sm:$0xff]  ;;  %v133_v25 = vld [vmem:[#allocation7 + $0xd0] sm:$0xff] }
  0x47   :  { %207 = vmatpush1.msra.mxu0 %v127_v7  ;;  %v111_v15 = vld [vmem:[#allocation7 + $0x20] sm:$0xff]  ;;  %v108_v16 = vld [vmem:[#allocation7 + $0x8] sm:$0xff]  ;;  %v130_v27 = vld [vmem:[#allocation7 + $0xb8] sm:$0xff]  ;;  %318 = vmatpush1.msra.mxu1 %v133_v25 }
  0x48   :  { %208 = vmatprep.subr.mxu0 %v124_v8  ;;  %v107_v17 = vld [vmem:[#allocation7] sm:$0xff]  ;;  %v3110_v24 = vld [vmem:[%s3967_s3 + $0x68] sm:$0xff]  ;;  %v3127_v29 = vld [vmem:[%s3967_s3 + $0x58] sm:$0xff]  ;;  %319 = vmatprep.subr.mxu1 %v130_v27 }
  0x49   :  { %209 = vmatpush1.msra.mxu0 %v123_v9  ;;  %v3095_v18 = vld [vmem:[#allocation5] sm:$0xff]  ;;  %v3121_v28 = vld [vmem:[#allocation5 + $0x8] sm:$0xff]  ;;  %v3133_v30 = vld [vmem:[%s3967_s3 + $0x50] sm:$0xff] }
  0x4a   :  { %210 = vmatprep.subr.mxu0 %v120_v10  ;;  %v3118_v26 = vld [vmem:[%s3967_s3 + $0x60] sm:$0xff]  ;;  %v3139_v31 = vld [vmem:[%s3967_s3 + $0x48] sm:$0xff]  ;;  %v129_v32 = vld [vmem:[#allocation7 + $0xb0] sm:$0xff] }
  0x4b   :  { %211 = vmatpush1.msra.mxu0 %v119_v11  ;;  %v3147_v33 = vld [vmem:[%s3967_s3 + $0x40] sm:$0xff]  ;;  %v126_v34 = vld [vmem:[#allocation7 + $0x98] sm:$0xff]  ;;  %v3150_v35 = vld [vmem:[#allocation5 + $0x10] sm:$0xff]  ;;  %320 = vmatpush1.msra.mxu1 %v129_v32 }
  0x4c   :  { %212 = vmatprep.subr.mxu0 %v116_v12  ;;  %v3156_v36 = vld [vmem:[%s3967_s3 + $0x38] sm:$0xff]  ;;  %v3162_v37 = vld [vmem:[%s3967_s3 + $0x30] sm:$0xff]  ;;  %v3168_v38 = vld [vmem:[%s3967_s3 + $0x28] sm:$0xff]  ;;  %321 = vmatprep.subr.mxu1 %v126_v34 }
  0x4d   :  { %213 = vmatpush1.msra.mxu0 %v115_v13  ;;  %v125_v39 = vld [vmem:[#allocation7 + $0x90] sm:$0xff]  ;;  %v3176_v40 = vld [vmem:[%s3967_s3 + $0x20] sm:$0xff]  ;;  %v122_v41 = vld [vmem:[#allocation7 + $0x78] sm:$0xff]  ;;  %v141_v13 = vlaneseq }
  0x4e   :  { %214 = vmatprep.subr.mxu0 %v112_v14  ;;  %v3179_v42 = vld [vmem:[#allocation5 + $0x18] sm:$0xff]  ;;  %v3191_v44 = vld [vmem:[%s3967_s3 + $0x10] sm:$0xff]  ;;  %322 = vmatpush1.msra.mxu1 %v125_v39  ;;  %v3197_v45 = vld [vmem:[%s3967_s3 + $0x8] sm:$0xff] }
  0x4f   :  { %215 = vmatpush1.msra.mxu0 %v111_v15  ;;  %v3185_v43 = vld [vmem:[%s3967_s3 + $0x18] sm:$0xff]  ;;  %323 = vmatprep.subr.mxu1 %v122_v41  ;;  %v121_v46 = vld [vmem:[#allocation7 + $0x70] sm:$0xff]  ;;  %v3205_v47 = vld [vmem:[%s3967_s3] sm:$0xff]  ;;  %v142_v14 = vshrl.u32 %v141_v13, 7 }
  0x50   :  { %216 = vmatprep.subr.mxu0 %v108_v16  ;;  %v118_v48 = vld [vmem:[#allocation7 + $0x58] sm:$0xff]  ;;  %v3208_v49 = vld [vmem:[#allocation5 + $0x20] sm:$0xff]  ;;  %v117_v50 = vld [vmem:[#allocation7 + $0x50] sm:$0xff]  ;;  %324 = vmatpush1.msra.mxu1 %v121_v46 }
  0x51   :  { %217 = vmatpush1.msra.mxu0 %v107_v17  ;;  %v114_v51 = vld [vmem:[#allocation7 + $0x38] sm:$0xff]  ;;  %325 = vmatprep.subr.mxu1 %v118_v48  ;;  %v113_v52 = vld [vmem:[#allocation7 + $0x30] sm:$0xff]  ;;  %v3216_v54 = vld [vmem:[#allocation5 + $0x28] sm:$0xff]  ;;  %v143_v15 = vsub.s32 0, %v142_v14 }
  0x52   :  { %2491 = vmatmul.mubr.msk.f32.vlgmr.msra.gmra.mxu0 %vm161_vm0, %v3095_v18  ;;  %497 = vmatprep.subr.mxu0 %v3100_v20  ;;  %v110_v53 = vld [vmem:[#allocation7 + $0x18] sm:$0xff]  ;;  %v109_v55 = vld [vmem:[#allocation7 + $0x10] sm:$0xff]  ;;  %v3233_v60 = vld [vmem:[#allocation10 + $0x60] sm:$0xff] }
  0x53   :  { %256 = vmatprep.mubr.f32.mxu0 %v3975_v0  ;;  %498 = vmatpush1.msra.mxu0 %v3105_v23  ;;  %v3219_v56 = vld [vmem:[#allocation10 + $0x78] sm:$0xff]  ;;  %v3223_v57 = vld [vmem:[#allocation10 + $0x70] sm:$0xff]  ;;  %v3228_v59 = vld [vmem:[#allocation10 + $0x68] sm:$0xff] }
  0x54   :  { %499 = vmatprep.subr.mxu0 %v3110_v24  ;;  %326 = vmatpush1.msra.mxu1 %v117_v50  ;;  %v105_v58 = vld [vmem:[#allocation5 + $0x30] sm:$0xff]  ;;  %v3237_v61 = vld [vmem:[#allocation10 + $0x58] sm:$0xff]  ;;  %v3251_v3 = vld [vmem:[#allocation10 + $0x40] sm:$0xff] }
  0x55   :  { %500 = vmatpush1.msra.mxu0 %v3118_v26  ;;  %327 = vmatprep.subr.mxu1 %v114_v51  ;;  %v106_v62 = vld [vmem:[#allocation5 + $0x38] sm:$0xff]  ;;  %v3247_v2 = vld [vmem:[#allocation10 + $0x48] sm:$0xff]  ;;  %v3270_v7 = vld [vmem:[#allocation10 + $0x20] sm:$0xff] }
  0x56   :  { %2492 = vmatmul.mubr.msk.f32.gmra.mxu0 %vm161_vm0, %v3121_v28  ;;  %501 = vmatprep.subr.mxu0 %v3127_v29  ;;  %v3242_v63 = vld [vmem:[#allocation10 + $0x50] sm:$0xff]  ;;  %v3256_v4 = vld [vmem:[#allocation10 + $0x38] sm:$0xff]  ;;  %v3266_v6 = vld [vmem:[#allocation10 + $0x28] sm:$0xff] }
  0x57   :  { %262 = vmatprep.mubr.f32.mxu0 %v3975_v0  ;;  %502 = vmatpush1.msra.mxu0 %v3133_v30  ;;  %v3261_v5 = vld [vmem:[#allocation10 + $0x30] sm:$0xff]  ;;  %v3275_v8 = vld [vmem:[#allocation10 + $0x18] sm:$0xff]  ;;  %v3282_v9 = vld [vmem:[#allocation10 + $0x8] sm:$0xff] }
  0x58   :  { %503 = vmatprep.subr.mxu0 %v3139_v31  ;;  %328 = vmatpush1.msra.mxu1 %v113_v52  ;;  %v3288_v10 = vld [vmem:[#allocation10] sm:$0xff]  ;;  %v139_v16 = vld [vmem:[#allocation9] sm:$0xf]  ;;  %v155_v52 = vsub.s32 3, %v142_v14 }
  0x59   :  { %504 = vmatpush1.msra.mxu0 %v3147_v33  ;;  %329 = vmatprep.subr.mxu1 %v110_v53  ;;  %v3319_v11 = vld [vmem:[%s3973_s9] sm:$0xff]  ;;  %v144_v21 = vrot.slane %v139_v16, %v143_v15 }
  0x5a   :  { %2493 = vmatmul.mubr.msk.f32.gmra.mxu0 %vm161_vm0, %v3150_v35  ;;  %505 = vmatprep.subr.mxu0 %v3156_v36 }
  0x5b   :  { %268 = vmatprep.mubr.f32.mxu0 %v3975_v0  ;;  %506 = vmatpush1.msra.mxu0 %v3162_v37 }
  0x5c   :  { %507 = vmatprep.subr.mxu0 %v3168_v38  ;;  %330 = vmatpush1.msra.mxu1 %v109_v55 }
  0x5d   :  { %508 = vmatpush1.msra.mxu0 %v3176_v40  ;;  %2499 = vmatmul.mubr.msk.f32.vlgmr.msra.gmra.mxu1 %vm161_vm0, %v3095_v18  ;;  %v147_v18 = vsub.s32 1, %v142_v14 }
  0x5e   :  { %2494 = vmatmul.mubr.msk.f32.gmra.mxu0 %vm161_vm0, %v3179_v42  ;;  %509 = vmatprep.subr.mxu0 %v3185_v43 }
  0x5f   :  { %274 = vmatprep.mubr.f32.mxu0 %v3975_v0  ;;  %510 = vmatpush1.msra.mxu0 %v3191_v44  ;;  %v148_v25 = vrot.slane %v139_v16, %v147_v18 }
  0x60   :  { %511 = vmatprep.subr.mxu0 %v3197_v45  ;;  %572 = vmatprep.subr.mxu1 %v3219_v56 }
  0x61   :  { %512 = vmatpush1.msra.mxu0 %v3205_v47  ;;  %369 = vmatprep.mubr.f32.mxu1 %v3975_v0 }
  0x62   :  { %2495 = vmatmul.mubr.msk.f32.gmra.mxu0 %vm161_vm0, %v3208_v49  ;;  %713 = vmatprep.subr.mxu0 %v3100_v20 }
  0x63   :  { %280 = vmatprep.mubr.f32.mxu0 %v3975_v0  ;;  %573 = vmatpush1.msra.mxu1 %v3223_v57 }
  0x64   :  { %574 = vmatprep.subr.mxu1 %v3228_v59  ;;  %2500 = vmatmul.mubr.msk.f32.gmra.mxu1 %vm161_vm0, %v3121_v28 }
  0x65   :  { %575 = vmatpush1.msra.mxu1 %v3233_v60  ;;  %375 = vmatprep.mubr.f32.mxu1 %v3975_v0 }
  0x66   :  { %2496 = vmatmul.mubr.msk.f32.gmra.mxu0 %vm161_vm0, %v3216_v54  ;;  %576 = vmatprep.subr.mxu1 %v3237_v61 }
  0x67   :  { %286 = vmatprep.mubr.f32.mxu0 %v3975_v0  ;;  %577 = vmatpush1.msra.mxu1 %v3242_v63 }
  0x68   :  { %2501 = vmatmul.mubr.msk.f32.gmra.mxu1 %vm161_vm0, %v3150_v35  ;;  %578 = vmatprep.subr.mxu1 %v3247_v2 }
  0x69   :  { %381 = vmatprep.mubr.f32.mxu1 %v3975_v0  ;;  %579 = vmatpush1.msra.mxu1 %v3251_v3 }
  0x6a   :  { %2497 = vmatmul.mubr.msk.f32.gmra.mxu0 %vm161_vm0, %v105_v58  ;;  %580 = vmatprep.subr.mxu1 %v3256_v4 }
  0x6b   :  { %292 = vmatprep.mubr.f32.mxu0 %v3975_v0  ;;  %581 = vmatpush1.msra.mxu1 %v3261_v5 }
  0x6c   :  { %2502 = vmatmul.mubr.msk.f32.gmra.mxu1 %vm161_vm0, %v3179_v42  ;;  %582 = vmatprep.subr.mxu1 %v3266_v6 }
  0x6d   :  { %387 = vmatprep.mubr.f32.mxu1 %v3975_v0  ;;  %583 = vmatpush1.msra.mxu1 %v3270_v7 }
  0x6e   :  { %2498 = vmatmul.mubr.msk.f32.gmra.mxu0 %vm161_vm0, %v106_v62  ;;  %584 = vmatprep.subr.mxu1 %v3275_v8 }
  0x6f   :  { %545 = vmatprep.mubr.f32.mxu0 %v3975_v0  ;;  %650 = vrot.lane.b32.xlu1 %v3319_v11, %s3015_s23 }
  0x70   :  { %2503 = vmatmul.mubr.msk.f32.gmra.mxu1 %vm161_vm0, %v3208_v49  ;;  %v151_v49 = vsub.s32 2, %v142_v14 }
  0x71   :  { %393 = vmatprep.mubr.f32.mxu1 %v3975_v0 }
  0x72   :  { %2507 = vmatmul.mubr.msk.f32.vlgmr.msra.gmra.mxu0 %vm161_vm0, %v3091_v1  ;;  %v3278_v1 = vld [vmem:[#allocation10 + $0x10] sm:$0xff]  ;;  %v152_v55 = vrot.slane %v139_v16, %v151_v49 }
  0x73   :  { %714 = vmatpush1.msra.mxu0 %v3105_v23  ;;  %585 = vmatpush1.msra.mxu1 %v3278_v1 }
  0x74   :  { %715 = vmatprep.subr.mxu0 %v3110_v24  ;;  %586 = vmatprep.subr.mxu1 %v3282_v9 }
  0x75   :  { %716 = vmatpush1.msra.mxu0 %v3118_v26  ;;  %587 = vmatpush1.msra.mxu1 %v3288_v10 }
  0x76   :  { %717 = vmatprep.subr.mxu0 %v3127_v29  ;;  %2504 = vmatmul.mubr.msk.f32.gmra.mxu1 %vm161_vm0, %v3216_v54 }
  0x77   :  { %718 = vmatpush1.msra.mxu0 %v3133_v30  ;;  %399 = vmatprep.mubr.f32.mxu1 %v3975_v0 }
  0x78   :  { %719 = vmatprep.subr.mxu0 %v3139_v31  ;;  %761 = vmatprep.mubr.f32.mxu0 %v3975_v0 }
  0x79   :  { %720 = vmatpush1.msra.mxu0 %v3147_v33  ;;  %786 = vmatprep.subr.mxu1 %v3219_v56 }
  0x7a   :  { %721 = vmatprep.subr.mxu0 %v3156_v36  ;;  %2505 = vmatmul.mubr.msk.f32.gmra.mxu1 %vm161_vm0, %v105_v58 }
  0x7b   :  { %722 = vmatpush1.msra.mxu0 %v3162_v37  ;;  %405 = vmatprep.mubr.f32.mxu1 %v3975_v0 }
  0x7c   :  { %723 = vmatprep.subr.mxu0 %v3168_v38 }
  0x7d   :  { %724 = vmatpush1.msra.mxu0 %v3176_v40 }
  0x7e   :  { %725 = vmatprep.subr.mxu0 %v3185_v43  ;;  %2506 = vmatmul.mubr.msk.f32.gmra.mxu1 %vm161_vm0, %v106_v62 }
  0x7f   :  { %726 = vmatpush1.msra.mxu0 %v3191_v44  ;;  %620 = vmatprep.mubr.f32.mxu1 %v3975_v0 }
  0x80   :  { %727 = vmatprep.subr.mxu0 %v3197_v45 }
  0x81   :  { %728 = vmatpush1.msra.mxu0 %v3205_v47 }
  0x82   :  { %925 = vmatprep.subr.mxu0 %v3100_v20 }
  0xb4   :  { %v553_v12 = vpop.permute.xlu0 %552 }
  0xb5   :  { %2508 = vmatmul.mubr.msk.f32.vlgmr.msra.gmra.mxu1 %vm161_vm0, %v553_v12  ;;  %v3357_v12 = vrot.slane %v139_v16, %v155_v52 }
  0xb6   :  { %787 = vmatpush1.msra.mxu1 %v3223_v57  ;;  %834 = vmatprep.mubr.f32.mxu1 %v3975_v0 }
  0xb7   :  { %788 = vmatprep.subr.mxu1 %v3228_v59 }
  0xb8   :  { %789 = vmatpush1.msra.mxu1 %v3233_v60 }
  0xb9   :  { %790 = vmatprep.subr.mxu1 %v3237_v61 }
  0xba   :  { %791 = vmatpush1.msra.mxu1 %v3242_v63 }
  0xbb   :  { %792 = vmatprep.subr.mxu1 %v3247_v2 }
  0xbc   :  { %793 = vmatpush1.msra.mxu1 %v3251_v3 }
  0xbd   :  { %794 = vmatprep.subr.mxu1 %v3256_v4 }
  0xbe   :  { %795 = vmatpush1.msra.mxu1 %v3261_v5 }
  0xbf   :  { %796 = vmatprep.subr.mxu1 %v3266_v6 }
  0xc0   :  { %797 = vmatpush1.msra.mxu1 %v3270_v7 }
  0xc1   :  { %798 = vmatprep.subr.mxu1 %v3275_v8 }
  0xc2   :  { %799 = vmatpush1.msra.mxu1 %v3278_v1 }
  0xc3   :  { %800 = vmatprep.subr.mxu1 %v3282_v9 }
  0xc4   :  { %801 = vmatpush1.msra.mxu1 %v3288_v10 }
  0xc5   :  { %998 = vmatprep.subr.mxu1 %v3219_v56 }
 0x112   :  { %v252_v17 = vpop.f32.mrf.mxu0 }
 0x114   :  { %v254_v19 = vpop.f32.mrf.mxu0 }
 0x116   :  { %v258_v22 = vpop.f32.mrf.mxu0 }
 0x117   :  { %v3341_v27 = vadd.f32 %v258_v22, %v144_v21 }
 0x118   :  { %v260_v28 = vpop.f32.mrf.mxu0 }
 0x119   :  { %v3343_v32 = vadd.f32 %v260_v28, %v148_v25 }
 0x11a   :  { %v264_v34 = vpop.f32.mrf.mxu0 }
 0x11b   :  { %v3345_v35 = vadd.f32 %v264_v34, %v144_v21 }
 0x11c   :  { %v266_v39 = vpop.f32.mrf.mxu0 }
 0x11d   :  { %v3347_v41 = vadd.f32 %v266_v39, %v148_v25  ;;  %v365_v15 = vpop.f32.mrf.mxu1 }
 0x11e   :  { %v270_v42 = vpop.f32.mrf.mxu0  ;;  %v3361_v22 = vadd.f32 %v365_v15, %v152_v55  ;;  %v253_v15 = vadd.f32 %v252_v17, %v144_v21 }
 0x11f   :  { %v3349_v46 = vadd.f32 %v270_v42, %v144_v21  ;;  %v367_v34 = vpop.f32.mrf.mxu1 }
 0x120   :  { %v272_v48 = vpop.f32.mrf.mxu0  ;;  %3980 = vst [vmem:[#allocation19_spill] sm:$0xff] %v3361_v22  ;;  %v3366_v14 = vadd.f32 %v367_v34, %v3357_v12 }
 0x121   :  { %v3351_v50 = vadd.f32 %v272_v48, %v148_v25 }
 0x122   :  { %v276_v51 = vpop.f32.mrf.mxu0  ;;  %3982 = vst [vmem:[#allocation21_spill] sm:$0xff] %v3366_v14 }
 0x123   :  { %v3353_v53 = vadd.f32 %v276_v51, %v144_v21 }
 0x124   :  { %v278_v54 = vpop.f32.mrf.mxu0  ;;  %v371_v48 = vpop.f32.mrf.mxu1 }
 0x125   :  { %3977 = vst [vmem:[#allocation16_spill] sm:$0xff] %v3353_v53  ;;  %v3355_v58 = vadd.f32 %v278_v54, %v148_v25  ;;  %v3370_v51 = vadd.f32 %v371_v48, %v152_v55 }
 0x126   :  { %v282_v62 = vpop.f32.mrf.mxu0  ;;  %v373_v52 = vpop.f32.mrf.mxu1 }
 0x127   :  { %3978 = vst [vmem:[#allocation17_spill] sm:$0xff] %v3355_v58  ;;  %v3359_v13 = vadd.f32 %v282_v62, %v144_v21  ;;  %3984 = vst [vmem:[#allocation23_spill] sm:$0xff] %v3370_v51  ;;  %v3375_v62 = vadd.f32 %v373_v52, %v3357_v12 }
 0x128   :  { %v284_v18 = vpop.f32.mrf.mxu0  ;;  %v377_v0 = vpop.f32.mrf.mxu1 }
 0x129   :  { %3979 = vst [vmem:[#allocation18_spill] sm:$0xff] %v3359_v13  ;;  %v3363_v28 = vadd.f32 %v284_v18, %v148_v25  ;;  %3986 = vst [vmem:[#allocation25_spill] sm:$0xff] %v3375_v62  ;;  %v3379_v34 = vadd.f32 %v377_v0, %v152_v55 }
 0x12a   :  { %v288_v39 = vpop.f32.mrf.mxu0  ;;  %v379_v14 = vpop.f32.mrf.mxu1 }
 0x12b   :  { %3981 = vst [vmem:[#allocation20_spill] sm:$0xff] %v3363_v28  ;;  %v3368_v42 = vadd.f32 %v288_v39, %v144_v21  ;;  %3988 = vst [vmem:[#allocation27_spill] sm:$0xff] %v3379_v34  ;;  %v3384_v48 = vadd.f32 %v379_v14, %v3357_v12 }
 0x12c   :  { %v290_v49 = vpop.f32.mrf.mxu0  ;;  %v383_v51 = vpop.f32.mrf.mxu1 }
 0x12d   :  { %3983 = vst [vmem:[#allocation22_spill] sm:$0xff] %v3368_v42  ;;  %v3372_v16 = vadd.f32 %v290_v49, %v148_v25  ;;  %3990 = vst [vmem:[#allocation29_spill] sm:$0xff] %v3384_v48 }
 0x12e   :  { %v294_v54 = vpop.f32.mrf.mxu0  ;;  %v385_v62 = vpop.f32.mrf.mxu1 }
 0x12f   :  { %3985 = vst [vmem:[#allocation24_spill] sm:$0xff] %v3372_v16  ;;  %v3377_v18 = vadd.f32 %v294_v54, %v144_v21  ;;  %v3386_v16 = vadd.f32 %v383_v51, %v152_v55  ;;  %v3389_v17 = vadd.f32 %v385_v62, %v3357_v12 }
 0x130   :  { %v296_v22 = vpop.f32.mrf.mxu0  ;;  %v389_v21 = vpop.f32.mrf.mxu1 }
 0x131   :  { %3987 = vst [vmem:[#allocation26_spill] sm:$0xff] %v3377_v18  ;;  %v3381_v39 = vadd.f32 %v296_v22, %v148_v25  ;;  %3991 = vst [vmem:[#allocation30_spill] sm:$0xff] %v3386_v16  ;;  %v3391_v0 = vadd.f32 %v389_v21, %v152_v55 }
 0x132   :  { %v547_v42 = vpop.f32.mrf.mxu0  ;;  %3992 = vst [vmem:[#allocation31_spill] sm:$0xff] %v3389_v17  ;;  %v391_v22 = vpop.f32.mrf.mxu1 }
 0x133   :  { %3989 = vst [vmem:[#allocation28_spill] sm:$0xff] %v3381_v39  ;;  %v629_v49 = vadd.f32 %v547_v42, %v253_v15  ;;  %v3394_v54 = vadd.f32 %v391_v22, %v3357_v12  ;;  %v255_v42 = vadd.f32 %v254_v19, %v148_v25 }
 0x134   :  { %v549_v51 = vpop.f32.mrf.mxu0 }
 0x135   :  { %v2509_v52 = vmul.f32 -1.442695, %v629_v49 }
 0x136   :  { %v395_v39 = vpop.f32.mrf.mxu1 }
 0x137   :  { %2673 = vpow2.f32 %v2509_v52  ;;  %v3396_v14 = vadd.f32 %v395_v39, %v152_v55  ;;  %v630_v52 = vadd.f32 %v549_v51, %v255_v42 }
 0x138   :  { %v397_v15 = vpop.f32.mrf.mxu1 }
 0x139   :  { %v3399_v49 = vadd.f32 %v397_v15, %v3357_v12  ;;  %2675 = vtanh.f32 %v630_v52 }
 0x13a   :  { %v401_v18 = vpop.f32.mrf.mxu1 }
 0x13b   :  { %v3401_v62 = vadd.f32 %v401_v18, %v152_v55 }
 0x13c   :  { %v403_v48 = vpop.f32.mrf.mxu1 }
 0x13d   :  { %v3404_v21 = vadd.f32 %v403_v48, %v3357_v12 }
 0x13e   :  { %v407_v25 = vpop.f32.mrf.mxu1 }
 0x13f   :  { %v408_v13 = vadd.f32 %v407_v25, %v152_v55  ;;  %v651_v25 = vpop.permute.xlu1 %650 }
 0x140   :  { %v409_v15 = vpop.f32.mrf.mxu1 }
 0x141   :  { %v410_v48 = vadd.f32 %v409_v15, %v3357_v12 }
 0x144   :  { %v2674_v34 = vpop.eup %2673 }
 0x145   :  { %v642_v22 = vadd.f32 1.0, %v2674_v34 }
 0x146   :  { %v2676_v39 = vpop.eup %2675 }
 0x147   :  { %2677 = vrcp.f32 %v642_v22 }
 0x154   :  { %v2678_v28 = vpop.eup %2677 }
 0x155   :  { %v654_v19 = vmul.f32 %v2678_v28, %v2676_v39 }
 0x157   :  { %656 = vrot.lane.b32.xlu1 %v654_v19, %s3015_s23  ;;  %v2510_v19 = vmul.f32 -1.442695, %v630_v52 }
 0x175   :  { %v622_v17 = vpop.f32.mrf.mxu1 }
 0x176   :  { %v634_v18 = vadd.f32 %v622_v17, %v408_v13  ;;  %v653_v17 = vmul.f32 %v2678_v28, %v651_v25 }
 0x177   :  { %v624_v42 = vpop.f32.mrf.mxu1 }
 0x178   :  { %v2511_v16 = vmul.f32 -1.442695, %v634_v18  ;;  %v635_v51 = vadd.f32 %v624_v42, %v410_v48 }
 0x17a   :  { %2679 = vpow2.f32 %v2511_v16  ;;  %v2512_v42 = vmul.f32 -1.442695, %v635_v51 }
 0x17b   :  { %2681 = vtanh.f32 %v635_v51  ;;  %v3993_v51 = vmov 0.0  }
 0x187   :  { %v2680_v58 = vpop.eup %2679 }
 0x188   :  { %v668_v34 = vadd.f32 1.0, %v2680_v58  ;;  %v2682_v22 = vpop.eup %2681 }
 0x18a   :  { %2683 = vrcp.f32 %v668_v34 }
 0x18b   :  { %2685 = vpow2.f32 %v2510_v19 }
 0x197   :  { %v2684_v53 = vpop.eup %2683 }
 0x198   :  { %v676_v39 = vmul.f32 %v2684_v53, %v2682_v22  ;;  %v2686_v55 = vpop.eup %2685  ;;  %v675_v34 = vmul.f32 %v2684_v53, %v3319_v11 }
 0x199   :  { %v643_v13 = vadd.f32 1.0, %v2686_v55 }
 0x19a   :  { %678 = vrot.lane.b32.xlu0 %v676_v39, %s3015_s23 }
 0x19b   :  { %2687 = vrcp.f32 %v643_v13 }
 0x1a8   :  { %v2688_v58 = vpop.eup %2687 }
 0x1c9   :  { %v657_v16 = vpop.permute.xlu1 %656 }
 0x1ca   :  { %v3409_v18 = vadd.f32 %v657_v16, %v653_v17 }
 0x1cc   :  { %2689 = vtanh.f32 %v3409_v18 }
 0x1cd   :  { %2691 = vpow2.f32 %v2512_v42 }
 0x1d9   :  { %v2690_v12 = vpop.eup %2689 }
 0x1da   :  { %v661_v15 = vmul.f32 %v2690_v12, %v2688_v58  ;;  %v2692_v48 = vpop.eup %2691 }
 0x1db   :  { %v669_v52 = vadd.f32 1.0, %v2692_v48 }
 0x1dc   :  { %685 = vrot.lane.b32.xlu1 %v661_v15, %s3015_s23 }
 0x1dd   :  { %2693 = vrcp.f32 %v669_v52 }
 0x1ea   :  { %v2694_v28 = vpop.eup %2693 }
 0x20c   :  { %v679_v22 = vpop.permute.xlu0 %678 }
 0x20d   :  { %v3414_v39 = vadd.f32 %v679_v22, %v675_v34 }
 0x20f   :  { %2695 = vtanh.f32 %v3414_v39 }
 0x21c   :  { %v2696_v19 = vpop.eup %2695 }
 0x21d   :  { %v683_v55 = vmul.f32 %v2696_v19, %v2694_v28 }
 0x21f   :  { %690 = vrot.lane.b32.xlu0 %v683_v55, %s3015_s23 }
 0x24e   :  { %v686_v25 = vpop.permute.xlu1 %685 }
 0x24f   :  { %688 = vst.msk [vmem:[#allocation3] sm:$0xff] %vm161_vm0, %v686_v25  ;;  %2513 = vmatmul.mubr.msk.f32.vlgmr.msra.gmra.mxu0 %vm161_vm0, %v686_v25 }
 0x250   :  { %926 = vmatpush1.msra.mxu0 %v3105_v23  ;;  %973 = vmatprep.mubr.f32.mxu0 %v3993_v51 }
 0x251   :  { %927 = vmatprep.subr.mxu0 %v3110_v24 }
 0x252   :  { %928 = vmatpush1.msra.mxu0 %v3118_v26 }
 0x253   :  { %929 = vmatprep.subr.mxu0 %v3127_v29 }
 0x254   :  { %930 = vmatpush1.msra.mxu0 %v3133_v30 }
 0x255   :  { %931 = vmatprep.subr.mxu0 %v3139_v31 }
 0x256   :  { %932 = vmatpush1.msra.mxu0 %v3147_v33 }
 0x257   :  { %933 = vmatprep.subr.mxu0 %v3156_v36 }
 0x258   :  { %934 = vmatpush1.msra.mxu0 %v3162_v37 }
 0x259   :  { %935 = vmatprep.subr.mxu0 %v3168_v38 }
 0x25a   :  { %936 = vmatpush1.msra.mxu0 %v3176_v40 }
 0x25b   :  { %937 = vmatprep.subr.mxu0 %v3185_v43 }
 0x25c   :  { %938 = vmatpush1.msra.mxu0 %v3191_v44 }
 0x25d   :  { %939 = vmatprep.subr.mxu0 %v3197_v45 }
 0x25e   :  { %940 = vmatpush1.msra.mxu0 %v3205_v47 }
 0x25f   :  { %1137 = vmatprep.subr.mxu0 %v3100_v20 }
 0x291   :  { %v691_v11 = vpop.permute.xlu0 %690 }
 0x292   :  { %694 = vst.msk [vmem:[#allocation4 + $0x38] sm:$0xff] %vm161_vm0, %v691_v11  ;;  %2514 = vmatmul.mubr.msk.f32.vlgmr.msra.gmra.mxu1 %vm161_vm0, %v691_v11 }
 0x293   :  { %999 = vmatpush1.msra.mxu1 %v3223_v57  ;;  %1046 = vmatprep.mubr.f32.mxu1 %v3993_v51 }
 0x294   :  { %1000 = vmatprep.subr.mxu1 %v3228_v59 }
 0x295   :  { %1001 = vmatpush1.msra.mxu1 %v3233_v60 }
 0x296   :  { %1002 = vmatprep.subr.mxu1 %v3237_v61 }
 0x297   :  { %1003 = vmatpush1.msra.mxu1 %v3242_v63 }
 0x298   :  { %1004 = vmatprep.subr.mxu1 %v3247_v2 }
 0x299   :  { %1005 = vmatpush1.msra.mxu1 %v3251_v3 }
 0x29a   :  { %1006 = vmatprep.subr.mxu1 %v3256_v4 }
 0x29b   :  { %1007 = vmatpush1.msra.mxu1 %v3261_v5 }
 0x29c   :  { %1008 = vmatprep.subr.mxu1 %v3266_v6 }
 0x29d   :  { %1009 = vmatpush1.msra.mxu1 %v3270_v7 }
 0x29e   :  { %1010 = vmatprep.subr.mxu1 %v3275_v8 }
 0x29f   :  { %1011 = vmatpush1.msra.mxu1 %v3278_v1 }
 0x2a0   :  { %1012 = vmatprep.subr.mxu1 %v3282_v9 }
 0x2a1   :  { %1013 = vmatpush1.msra.mxu1 %v3288_v10 }
 0x2a2   :  { %1210 = vmatprep.subr.mxu1 %v3219_v56 }
 0x30f   :  { %v763_v53 = vpop.f32.mrf.mxu0 }
 0x310   :  { %v844_v13 = vadd.f32 %v763_v53, %v3341_v27 }
 0x311   :  { %v765_v16 = vpop.f32.mrf.mxu0 }
 0x312   :  { %v2515_v17 = vmul.f32 -1.442695, %v844_v13  ;;  %v845_v58 = vadd.f32 %v765_v16, %v3343_v32 }
 0x314   :  { %2697 = vpow2.f32 %v2515_v17  ;;  %v2516_v13 = vmul.f32 -1.442695, %v845_v58 }
 0x315   :  { %2699 = vtanh.f32 %v845_v58 }
 0x321   :  { %v2698_v12 = vpop.eup %2697 }
 0x322   :  { %v857_v15 = vadd.f32 1.0, %v2698_v12  ;;  %v2700_v42 = vpop.eup %2699 }
 0x324   :  { %2701 = vrcp.f32 %v857_v15 }
 0x331   :  { %v2702_v48 = vpop.eup %2701 }
 0x332   :  { %v865_v52 = vmul.f32 %v2702_v48, %v2700_v42 }
 0x334   :  { %867 = vrot.lane.b32.xlu1 %v865_v52, %s3015_s23 }
 0x352   :  { %v836_v34 = vpop.f32.mrf.mxu1 }
 0x353   :  { %v849_v22 = vadd.f32 %v836_v34, %v3401_v62  ;;  %v864_v62 = vmul.f32 %v2702_v48, %v3409_v18 }
 0x354   :  { %v838_v27 = vpop.f32.mrf.mxu1 }
 0x355   :  { %v2517_v28 = vmul.f32 -1.442695, %v849_v22  ;;  %v850_v19 = vadd.f32 %v838_v27, %v3404_v21 }
 0x357   :  { %2703 = vpow2.f32 %v2517_v28  ;;  %v2518_v34 = vmul.f32 -1.442695, %v850_v19 }
 0x358   :  { %2705 = vtanh.f32 %v850_v19 }
 0x364   :  { %v2704_v55 = vpop.eup %2703 }
 0x365   :  { %v879_v25 = vadd.f32 1.0, %v2704_v55  ;;  %v2706_v32 = vpop.eup %2705 }
 0x367   :  { %2707 = vrcp.f32 %v879_v25 }
 0x368   :  { %2709 = vpow2.f32 %v2516_v13 }
 0x374   :  { %v2708_v11 = vpop.eup %2707 }
 0x375   :  { %v887_v53 = vmul.f32 %v2708_v11, %v2706_v32  ;;  %v2710_v17 = vpop.eup %2709  ;;  %v886_v28 = vmul.f32 %v2708_v11, %v3414_v39 }
 0x376   :  { %v858_v16 = vadd.f32 1.0, %v2710_v17 }
 0x377   :  { %889 = vrot.lane.b32.xlu0 %v887_v53, %s3015_s23 }
 0x378   :  { %2711 = vrcp.f32 %v858_v16 }
 0x385   :  { %v2712_v21 = vpop.eup %2711 }
 0x3a6   :  { %v868_v12 = vpop.permute.xlu1 %867 }
 0x3a7   :  { %v3463_v15 = vadd.f32 %v868_v12, %v864_v62 }
 0x3a9   :  { %2713 = vtanh.f32 %v3463_v15 }
 0x3aa   :  { %2715 = vpow2.f32 %v2518_v34 }
 0x3b6   :  { %v2714_v42 = vpop.eup %2713 }
 0x3b7   :  { %v872_v52 = vmul.f32 %v2714_v42, %v2712_v21  ;;  %v2716_v22 = vpop.eup %2715 }
 0x3b8   :  { %v880_v58 = vadd.f32 1.0, %v2716_v22 }
 0x3b9   :  { %896 = vrot.lane.b32.xlu1 %v872_v52, %s3015_s23 }
 0x3ba   :  { %2717 = vrcp.f32 %v880_v58 }
 0x3c7   :  { %v2718_v18 = vpop.eup %2717 }
 0x3e9   :  { %v890_v27 = vpop.permute.xlu0 %889 }
 0x3ea   :  { %v3468_v55 = vadd.f32 %v890_v27, %v886_v28 }
 0x3ec   :  { %2719 = vtanh.f32 %v3468_v55 }
 0x3f9   :  { %v2720_v48 = vpop.eup %2719 }
 0x3fa   :  { %v894_v25 = vmul.f32 %v2720_v48, %v2718_v18 }
 0x3fc   :  { %902 = vrot.lane.b32.xlu0 %v894_v25, %s3015_s23 }
 0x42b   :  { %v897_v32 = vpop.permute.xlu1 %896 }
 0x42c   :  { %900 = vst.msk [vmem:[#allocation3 + $0x8] sm:$0xff] %vm161_vm0, %v897_v32  ;;  %2519 = vmatmul.mubr.msk.f32.vlgmr.msra.gmra.mxu0 %vm161_vm0, %v897_v32 }
 0x42d   :  { %1138 = vmatpush1.msra.mxu0 %v3105_v23  ;;  %1185 = vmatprep.mubr.f32.mxu0 %v3993_v51 }
 0x42e   :  { %1139 = vmatprep.subr.mxu0 %v3110_v24 }
 0x42f   :  { %1140 = vmatpush1.msra.mxu0 %v3118_v26 }
 0x430   :  { %1141 = vmatprep.subr.mxu0 %v3127_v29 }
 0x431   :  { %1142 = vmatpush1.msra.mxu0 %v3133_v30 }
 0x432   :  { %1143 = vmatprep.subr.mxu0 %v3139_v31 }
 0x433   :  { %1144 = vmatpush1.msra.mxu0 %v3147_v33 }
 0x434   :  { %1145 = vmatprep.subr.mxu0 %v3156_v36 }
 0x435   :  { %1146 = vmatpush1.msra.mxu0 %v3162_v37 }
 0x436   :  { %1147 = vmatprep.subr.mxu0 %v3168_v38 }
 0x437   :  { %1148 = vmatpush1.msra.mxu0 %v3176_v40 }
 0x438   :  { %1149 = vmatprep.subr.mxu0 %v3185_v43 }
 0x439   :  { %1150 = vmatpush1.msra.mxu0 %v3191_v44 }
 0x43a   :  { %1151 = vmatprep.subr.mxu0 %v3197_v45 }
 0x43b   :  { %1152 = vmatpush1.msra.mxu0 %v3205_v47 }
 0x43c   :  { %1349 = vmatprep.subr.mxu0 %v3100_v20 }
 0x46e   :  { %v903_v39 = vpop.permute.xlu0 %902 }
 0x46f   :  { %906 = vst.msk [vmem:[#allocation4 + $0x30] sm:$0xff] %vm161_vm0, %v903_v39  ;;  %2520 = vmatmul.mubr.msk.f32.vlgmr.msra.gmra.mxu1 %vm161_vm0, %v903_v39 }
 0x470   :  { %1211 = vmatpush1.msra.mxu1 %v3223_v57  ;;  %1258 = vmatprep.mubr.f32.mxu1 %v3993_v51 }
 0x471   :  { %1212 = vmatprep.subr.mxu1 %v3228_v59 }
 0x472   :  { %1213 = vmatpush1.msra.mxu1 %v3233_v60 }
 0x473   :  { %1214 = vmatprep.subr.mxu1 %v3237_v61 }
 0x474   :  { %1215 = vmatpush1.msra.mxu1 %v3242_v63 }
 0x475   :  { %1216 = vmatprep.subr.mxu1 %v3247_v2 }
 0x476   :  { %1217 = vmatpush1.msra.mxu1 %v3251_v3 }
 0x477   :  { %1218 = vmatprep.subr.mxu1 %v3256_v4 }
 0x478   :  { %1219 = vmatpush1.msra.mxu1 %v3261_v5 }
 0x479   :  { %1220 = vmatprep.subr.mxu1 %v3266_v6 }
 0x47a   :  { %1221 = vmatpush1.msra.mxu1 %v3270_v7 }
 0x47b   :  { %1222 = vmatprep.subr.mxu1 %v3275_v8 }
 0x47c   :  { %1223 = vmatpush1.msra.mxu1 %v3278_v1 }
 0x47d   :  { %1224 = vmatprep.subr.mxu1 %v3282_v9 }
 0x47e   :  { %1225 = vmatpush1.msra.mxu1 %v3288_v10 }
 0x47f   :  { %1422 = vmatprep.subr.mxu1 %v3219_v56 }
 0x4ec   :  { %v975_v20 = vpop.f32.mrf.mxu0 }
 0x4ed   :  { %v1056_v19 = vadd.f32 %v975_v20, %v3345_v35 }
 0x4ee   :  { %v977_v53 = vpop.f32.mrf.mxu0 }
 0x4ef   :  { %v2521_v11 = vmul.f32 -1.442695, %v1056_v19  ;;  %v1057_v13 = vadd.f32 %v977_v53, %v3347_v41 }
 0x4f1   :  { %2721 = vpow2.f32 %v2521_v11  ;;  %v2522_v48 = vmul.f32 -1.442695, %v1057_v13 }
 0x4f2   :  { %2723 = vtanh.f32 %v1057_v13 }
 0x4fe   :  { %v2722_v17 = vpop.eup %2721 }
 0x4ff   :  { %v1069_v16 = vadd.f32 1.0, %v2722_v17  ;;  %v2724_v62 = vpop.eup %2723 }
 0x501   :  { %2725 = vrcp.f32 %v1069_v16 }
 0x50e   :  { %v2726_v12 = vpop.eup %2725 }
 0x50f   :  { %v1077_v21 = vmul.f32 %v2726_v12, %v2724_v62 }
 0x511   :  { %1079 = vrot.lane.b32.xlu1 %v1077_v21, %s3015_s23 }
 0x52f   :  { %v1048_v42 = vpop.f32.mrf.mxu1 }
 0x530   :  { %v1061_v52 = vadd.f32 %v1048_v42, %v3396_v14  ;;  %v1076_v14 = vmul.f32 %v2726_v12, %v3463_v15 }
 0x531   :  { %v1050_v35 = vpop.f32.mrf.mxu1 }
 0x532   :  { %v2523_v34 = vmul.f32 -1.442695, %v1061_v52  ;;  %v1062_v22 = vadd.f32 %v1050_v35, %v3399_v49 }
 0x534   :  { %2727 = vpow2.f32 %v2523_v34  ;;  %v2524_v53 = vmul.f32 -1.442695, %v1062_v22 }
 0x535   :  { %2729 = vtanh.f32 %v1062_v22 }
 0x541   :  { %v2728_v58 = vpop.eup %2727 }
 0x542   :  { %v1091_v28 = vadd.f32 1.0, %v2728_v58  ;;  %v2730_v41 = vpop.eup %2729 }
 0x544   :  { %2731 = vrcp.f32 %v1091_v28 }
 0x545   :  { %2733 = vpow2.f32 %v2522_v48 }
 0x551   :  { %v2732_v27 = vpop.eup %2731 }
 0x552   :  { %v1099_v18 = vmul.f32 %v2732_v27, %v2730_v41  ;;  %v2734_v25 = vpop.eup %2733  ;;  %v1098_v16 = vmul.f32 %v2732_v27, %v3468_v55 }
 0x553   :  { %v1070_v32 = vadd.f32 1.0, %v2734_v25 }
 0x554   :  { %1101 = vrot.lane.b32.xlu0 %v1099_v18, %s3015_s23 }
 0x555   :  { %2735 = vrcp.f32 %v1070_v32 }
 0x562   :  { %v2736_v49 = vpop.eup %2735 }
 0x583   :  { %v1080_v39 = vpop.permute.xlu1 %1079 }
 0x584   :  { %v3517_v20 = vadd.f32 %v1080_v39, %v1076_v14  ;;  %v3590_v39 = vld [vmem:[%s3967_s3 + $0x70] sm:$0xff] }
 0x586   :  { %2737 = vtanh.f32 %v3517_v20 }
 0x587   :  { %2739 = vpow2.f32 %v2524_v53  ;;  %v3621_v53 = vld [vmem:[%s3967_s3 + $0x48] sm:$0xff] }
 0x593   :  { %v2738_v19 = vpop.eup %2737 }
 0x594   :  { %v1084_v11 = vmul.f32 %v2738_v19, %v2736_v49  ;;  %v2740_v17 = vpop.eup %2739  ;;  %v3603_v49 = vld [vmem:[%s3967_s3 + $0x60] sm:$0xff]  ;;  %v3609_v19 = vld [vmem:[%s3967_s3 + $0x58] sm:$0xff] }
 0x595   :  { %v1092_v13 = vadd.f32 1.0, %v2740_v17  ;;  %v3627_v17 = vld [vmem:[%s3967_s3 + $0x40] sm:$0xff] }
 0x596   :  { %1108 = vrot.lane.b32.xlu1 %v1084_v11, %s3015_s23  ;;  %v3615_v11 = vld [vmem:[%s3967_s3 + $0x50] sm:$0xff] }
 0x597   :  { %2741 = vrcp.f32 %v1092_v13  ;;  %v3633_v13 = vld [vmem:[%s3967_s3 + $0x38] sm:$0xff] }
 0x5a4   :  { %v2742_v15 = vpop.eup %2741 }
 0x5c6   :  { %v1102_v62 = vpop.permute.xlu0 %1101 }
 0x5c7   :  { %v3522_v21 = vadd.f32 %v1102_v62, %v1098_v16  ;;  %v3639_v16 = vld [vmem:[%s3967_s3 + $0x30] sm:$0xff]  ;;  %v3645_v62 = vld [vmem:[%s3967_s3 + $0x28] sm:$0xff] }
 0x5c9   :  { %2743 = vtanh.f32 %v3522_v21 }
 0x5d6   :  { %v2744_v12 = vpop.eup %2743 }
 0x5d7   :  { %v1106_v42 = vmul.f32 %v2744_v12, %v2742_v15  ;;  %v3657_v15 = vld [vmem:[%s3967_s3 + $0x18] sm:$0xff]  ;;  %v3663_v12 = vld [vmem:[%s3967_s3 + $0x10] sm:$0xff] }
 0x5d9   :  { %1114 = vrot.lane.b32.xlu0 %v1106_v42, %s3015_s23  ;;  %v3669_v42 = vld [vmem:[%s3967_s3 + $0x8] sm:$0xff] }
 0x608   :  { %v1109_v52 = vpop.permute.xlu1 %1108 }
 0x609   :  { %1112 = vst.msk [vmem:[#allocation3 + $0x10] sm:$0xff] %vm161_vm0, %v1109_v52  ;;  %2525 = vmatmul.mubr.msk.f32.vlgmr.msra.gmra.mxu0 %vm161_vm0, %v1109_v52  ;;  %v3675_v52 = vld [vmem:[%s3967_s3] sm:$0xff] }
 0x60a   :  { %1350 = vmatpush1.msra.mxu0 %v3105_v23  ;;  %1397 = vmatprep.mubr.f32.mxu0 %v3993_v51  ;;  %v3547_v23 = vld [vmem:[%s3967_s3 + $0x78] sm:$0xff] }
 0x60b   :  { %1351 = vmatprep.subr.mxu0 %v3110_v24 }
 0x60c   :  { %1352 = vmatpush1.msra.mxu0 %v3118_v26 }
 0x60d   :  { %1353 = vmatprep.subr.mxu0 %v3127_v29 }
 0x60e   :  { %1354 = vmatpush1.msra.mxu0 %v3133_v30 }
 0x60f   :  { %1355 = vmatprep.subr.mxu0 %v3139_v31 }
 0x610   :  { %1356 = vmatpush1.msra.mxu0 %v3147_v33 }
 0x611   :  { %1357 = vmatprep.subr.mxu0 %v3156_v36 }
 0x612   :  { %1358 = vmatpush1.msra.mxu0 %v3162_v37 }
 0x613   :  { %1359 = vmatprep.subr.mxu0 %v3168_v38 }
 0x614   :  { %1360 = vmatpush1.msra.mxu0 %v3176_v40 }
 0x615   :  { %1361 = vmatprep.subr.mxu0 %v3185_v43 }
 0x616   :  { %1362 = vmatpush1.msra.mxu0 %v3191_v44 }
 0x617   :  { %1363 = vmatprep.subr.mxu0 %v3197_v45 }
 0x618   :  { %1364 = vmatpush1.msra.mxu0 %v3205_v47 }
 0x619   :  { %1559 = vmatprep.subr.mxu0 %v3547_v23 }
 0x64b   :  { %v1115_v24 = vpop.permute.xlu0 %1114 }
 0x64c   :  { %1118 = vst.msk [vmem:[#allocation4 + $0x28] sm:$0xff] %vm161_vm0, %v1115_v24  ;;  %2526 = vmatmul.mubr.msk.f32.vlgmr.msra.gmra.mxu1 %vm161_vm0, %v1115_v24 }
 0x64d   :  { %1423 = vmatpush1.msra.mxu1 %v3223_v57  ;;  %1470 = vmatprep.mubr.f32.mxu1 %v3993_v51 }
 0x64e   :  { %1424 = vmatprep.subr.mxu1 %v3228_v59 }
 0x64f   :  { %1425 = vmatpush1.msra.mxu1 %v3233_v60 }
 0x650   :  { %1426 = vmatprep.subr.mxu1 %v3237_v61 }
 0x651   :  { %1427 = vmatpush1.msra.mxu1 %v3242_v63 }
 0x652   :  { %1428 = vmatprep.subr.mxu1 %v3247_v2 }
 0x653   :  { %1429 = vmatpush1.msra.mxu1 %v3251_v3 }
 0x654   :  { %1430 = vmatprep.subr.mxu1 %v3256_v4 }
 0x655   :  { %1431 = vmatpush1.msra.mxu1 %v3261_v5 }
 0x656   :  { %1432 = vmatprep.subr.mxu1 %v3266_v6 }
 0x657   :  { %1433 = vmatpush1.msra.mxu1 %v3270_v7 }
 0x658   :  { %1434 = vmatprep.subr.mxu1 %v3275_v8 }
 0x659   :  { %1435 = vmatpush1.msra.mxu1 %v3278_v1 }
 0x65a   :  { %1436 = vmatprep.subr.mxu1 %v3282_v9 }
 0x65b   :  { %1437 = vmatpush1.msra.mxu1 %v3288_v10 }
 0x65c   :  { %1632 = vmatprep.subr.mxu1 %v3219_v56 }
 0x6c9   :  { %v1187_v26 = vpop.f32.mrf.mxu0 }
 0x6ca   :  { %v1268_v29 = vadd.f32 %v1187_v26, %v3349_v46  ;;  %v3681_v26 = vld [vmem:[#allocation10 + $0x70] sm:$0xff] }
 0x6cb   :  { %v1189_v31 = vpop.f32.mrf.mxu0 }
 0x6cc   :  { %v2527_v30 = vmul.f32 -1.442695, %v1268_v29  ;;  %v1269_v33 = vadd.f32 %v1189_v31, %v3351_v50  ;;  %v3685_v29 = vld [vmem:[#allocation10 + $0x68] sm:$0xff]  ;;  %v3691_v31 = vld [vmem:[#allocation10 + $0x58] sm:$0xff] }
 0x6ce   :  { %2745 = vpow2.f32 %v2527_v30  ;;  %v2528_v3 = vmul.f32 -1.442695, %v1269_v33  ;;  %v3688_v30 = vld [vmem:[#allocation10 + $0x60] sm:$0xff] }
 0x6cf   :  { %2747 = vtanh.f32 %v1269_v33  ;;  %v3694_v33 = vld [vmem:[#allocation10 + $0x50] sm:$0xff] }
 0x6db   :  { %v2746_v36 = vpop.eup %2745 }
 0x6dc   :  { %v1281_v37 = vadd.f32 1.0, %v2746_v36  ;;  %v2748_v38 = vpop.eup %2747  ;;  %v3697_v36 = vld [vmem:[#allocation10 + $0x48] sm:$0xff] }
 0x6de   :  { %2749 = vrcp.f32 %v1281_v37  ;;  %v3700_v37 = vld [vmem:[#allocation10 + $0x40] sm:$0xff] }
 0x6eb   :  { %v2750_v40 = vpop.eup %2749 }
 0x6ec   :  { %v1289_v43 = vmul.f32 %v2750_v40, %v2748_v38  ;;  %v1288_v50 = vmul.f32 %v2750_v40, %v3517_v20  ;;  %v3597_v20 = vld [vmem:[%s3967_s3 + $0x68] sm:$0xff]  ;;  %v3703_v38 = vld [vmem:[#allocation10 + $0x38] sm:$0xff] }
 0x6ed   :  { %v3713_v40 = vld [vmem:[#allocation10 + $0x78] sm:$0xff] }
 0x6ee   :  { %1291 = vrot.lane.b32.xlu1 %v1289_v43, %s3015_s23 }
 0x70c   :  { %v1260_v44 = vpop.f32.mrf.mxu1 }
 0x70d   :  { %v1273_v45 = vadd.f32 %v1260_v44, %v3391_v0  ;;  %v3994_v44 = vld [vmem:[#allocation16_spill] sm:$0xff] }
 0x70e   :  { %v1262_v56 = vpop.f32.mrf.mxu1 }
 0x70f   :  { %v2529_v47 = vmul.f32 -1.442695, %v1273_v45  ;;  %v1274_v57 = vadd.f32 %v1262_v56, %v3394_v54 }
 0x711   :  { %2751 = vpow2.f32 %v2529_v47  ;;  %v2530_v22 = vmul.f32 -1.442695, %v1274_v57  ;;  %v3995_v47 = vld [vmem:[#allocation17_spill] sm:$0xff] }
 0x712   :  { %2753 = vtanh.f32 %v1274_v57 }
 0x71e   :  { %v2752_v59 = vpop.eup %2751 }
 0x71f   :  { %v1303_v60 = vadd.f32 1.0, %v2752_v59  ;;  %v2754_v61 = vpop.eup %2753  ;;  %v3996_v59 = vld [vmem:[#allocation30_spill] sm:$0xff] }
 0x721   :  { %2755 = vrcp.f32 %v1303_v60 }
 0x722   :  { %2757 = vpow2.f32 %v2528_v3 }
 0x72e   :  { %v2756_v63 = vpop.eup %2755 }
 0x72f   :  { %v1311_v2 = vmul.f32 %v2756_v63, %v2754_v61  ;;  %v2758_v4 = vpop.eup %2757  ;;  %v1310_v41 = vmul.f32 %v2756_v63, %v3522_v21  ;;  %v3651_v21 = vld [vmem:[%s3967_s3 + $0x20] sm:$0xff] }
 0x730   :  { %v1282_v46 = vadd.f32 1.0, %v2758_v4 }
 0x731   :  { %1313 = vrot.lane.b32.xlu0 %v1311_v2, %s3015_s23  ;;  %v3997_v2 = vld [vmem:[#allocation31_spill] sm:$0xff] }
 0x732   :  { %2759 = vrcp.f32 %v1282_v46 }
 0x73f   :  { %v2760_v54 = vpop.eup %2759 }
 0x760   :  { %v1292_v0 = vpop.permute.xlu1 %1291 }
 0x761   :  { %v3576_v55 = vadd.f32 %v1292_v0, %v1288_v50 }
 0x763   :  { %2761 = vtanh.f32 %v3576_v55 }
 0x764   :  { %2763 = vpow2.f32 %v2530_v22 }
 0x770   :  { %v2762_v34 = vpop.eup %2761 }
 0x771   :  { %v1296_v35 = vmul.f32 %v2762_v34, %v2760_v54  ;;  %v2764_v58 = vpop.eup %2763 }
 0x772   :  { %v1304_v28 = vadd.f32 1.0, %v2764_v58 }
 0x773   :  { %1320 = vrot.lane.b32.xlu1 %v1296_v35, %s3015_s23 }
 0x774   :  { %2765 = vrcp.f32 %v1304_v28 }
 0x781   :  { %v2766_v48 = vpop.eup %2765 }
 0x7a3   :  { %v1314_v27 = vpop.permute.xlu0 %1313 }
 0x7a4   :  { %v3581_v18 = vadd.f32 %v1314_v27, %v1310_v41 }
 0x7a6   :  { %2767 = vtanh.f32 %v3581_v18 }
 0x7b3   :  { %v2768_v25 = vpop.eup %2767 }
 0x7b4   :  { %v1318_v32 = vmul.f32 %v2768_v25, %v2766_v48 }
 0x7b6   :  { %1326 = vrot.lane.b32.xlu0 %v1318_v32, %s3015_s23 }
 0x7e5   :  { %v1321_v14 = vpop.permute.xlu1 %1320 }
 0x7e6   :  { %1324 = vst.msk [vmem:[#allocation3 + $0x18] sm:$0xff] %vm161_vm0, %v1321_v14  ;;  %2531 = vmatmul.mubr.msk.f32.vlgmr.msra.gmra.mxu0 %vm161_vm0, %v1321_v14 }
 0x7e7   :  { %1560 = vmatpush1.msra.mxu0 %v3590_v39  ;;  %1607 = vmatprep.mubr.f32.mxu0 %v3993_v51 }
 0x7e8   :  { %1561 = vmatprep.subr.mxu0 %v3597_v20 }
 0x7e9   :  { %1562 = vmatpush1.msra.mxu0 %v3603_v49 }
 0x7ea   :  { %1563 = vmatprep.subr.mxu0 %v3609_v19 }
 0x7eb   :  { %1564 = vmatpush1.msra.mxu0 %v3615_v11 }
 0x7ec   :  { %1565 = vmatprep.subr.mxu0 %v3621_v53 }
 0x7ed   :  { %1566 = vmatpush1.msra.mxu0 %v3627_v17 }
 0x7ee   :  { %1567 = vmatprep.subr.mxu0 %v3633_v13 }
 0x7ef   :  { %1568 = vmatpush1.msra.mxu0 %v3639_v16 }
 0x7f0   :  { %1569 = vmatprep.subr.mxu0 %v3645_v62 }
 0x7f1   :  { %1570 = vmatpush1.msra.mxu0 %v3651_v21 }
 0x7f2   :  { %1571 = vmatprep.subr.mxu0 %v3657_v15 }
 0x7f3   :  { %1572 = vmatpush1.msra.mxu0 %v3663_v12 }
 0x7f4   :  { %1573 = vmatprep.subr.mxu0 %v3669_v42 }
 0x7f5   :  { %1574 = vmatpush1.msra.mxu0 %v3675_v52 }
 0x7f6   :  { %1769 = vmatprep.subr.mxu0 %v3547_v23 }
 0x828   :  { %v1327_v24 = vpop.permute.xlu0 %1326 }
 0x829   :  { %1330 = vst.msk [vmem:[#allocation4 + $0x20] sm:$0xff] %vm161_vm0, %v1327_v24  ;;  %2532 = vmatmul.mubr.msk.f32.vlgmr.msra.gmra.mxu1 %vm161_vm0, %v1327_v24 }
 0x82a   :  { %1633 = vmatpush1.msra.mxu1 %v3681_v26  ;;  %1680 = vmatprep.mubr.f32.mxu1 %v3993_v51 }
 0x82b   :  { %1634 = vmatprep.subr.mxu1 %v3685_v29 }
 0x82c   :  { %1635 = vmatpush1.msra.mxu1 %v3688_v30 }
 0x82d   :  { %1636 = vmatprep.subr.mxu1 %v3691_v31 }
 0x82e   :  { %1637 = vmatpush1.msra.mxu1 %v3694_v33 }
 0x82f   :  { %1638 = vmatprep.subr.mxu1 %v3697_v36 }
 0x830   :  { %1639 = vmatpush1.msra.mxu1 %v3700_v37 }
 0x831   :  { %1640 = vmatprep.subr.mxu1 %v3703_v38 }
 0x832   :  { %1641 = vmatpush1.msra.mxu1 %v3261_v5 }
 0x833   :  { %1642 = vmatprep.subr.mxu1 %v3266_v6 }
 0x834   :  { %1643 = vmatpush1.msra.mxu1 %v3270_v7 }
 0x835   :  { %1644 = vmatprep.subr.mxu1 %v3275_v8 }
 0x836   :  { %1645 = vmatpush1.msra.mxu1 %v3278_v1 }
 0x837   :  { %1646 = vmatprep.subr.mxu1 %v3282_v9 }
 0x838   :  { %1647 = vmatpush1.msra.mxu1 %v3288_v10 }
 0x839   :  { %1842 = vmatprep.subr.mxu1 %v3713_v40 }
 0x8a6   :  { %v1399_v43 = vpop.f32.mrf.mxu0 }
 0x8a7   :  { %v1479_v45 = vadd.f32 %v1399_v43, %v3994_v44 }
 0x8a8   :  { %v1401_v6 = vpop.f32.mrf.mxu0 }
 0x8a9   :  { %v2533_v5 = vmul.f32 -1.442695, %v1479_v45  ;;  %v1480_v7 = vadd.f32 %v1401_v6, %v3995_v47 }
 0x8ab   :  { %2769 = vpow2.f32 %v2533_v5  ;;  %v2534_v34 = vmul.f32 -1.442695, %v1480_v7 }
 0x8ac   :  { %2771 = vtanh.f32 %v1480_v7  ;;  %v3765_v7 = vld [vmem:[#allocation10 + $0x28] sm:$0xff] }
 0x8b8   :  { %v2770_v56 = vpop.eup %2769 }
 0x8b9   :  { %v1491_v8 = vadd.f32 1.0, %v2770_v56  ;;  %v2772_v1 = vpop.eup %2771  ;;  %v3768_v56 = vld [vmem:[#allocation10 + $0x20] sm:$0xff] }
 0x8bb   :  { %2773 = vrcp.f32 %v1491_v8  ;;  %v3771_v8 = vld [vmem:[#allocation10 + $0x18] sm:$0xff] }
 0x8c8   :  { %v2774_v9 = vpop.eup %2773 }
 0x8c9   :  { %v1499_v57 = vmul.f32 %v2774_v9, %v2772_v1  ;;  %v1498_v58 = vmul.f32 %v2774_v9, %v3576_v55  ;;  %v3774_v1 = vld [vmem:[#allocation10 + $0x10] sm:$0xff]  ;;  %v3777_v9 = vld [vmem:[#allocation10 + $0x8] sm:$0xff] }
 0x8cb   :  { %1501 = vrot.lane.b32.xlu1 %v1499_v57, %s3015_s23  ;;  %v3780_v57 = vld [vmem:[#allocation10] sm:$0xff] }
 0x8e9   :  { %v1472_v10 = vpop.f32.mrf.mxu1 }
 0x8ea   :  { %v1483_v60 = vadd.f32 %v1472_v10, %v3996_v59  ;;  %v3998_v59 = vld [vmem:[#allocation18_spill] sm:$0xff] }
 0x8eb   :  { %v1474_v63 = vpop.f32.mrf.mxu1 }
 0x8ec   :  { %v2535_v61 = vmul.f32 -1.442695, %v1483_v60  ;;  %v1484_v3 = vadd.f32 %v1474_v63, %v3997_v2  ;;  %v3999_v2 = vld [vmem:[#allocation20_spill] sm:$0xff] }
 0x8ee   :  { %2775 = vpow2.f32 %v2535_v61  ;;  %v2536_v32 = vmul.f32 -1.442695, %v1484_v3 }
 0x8ef   :  { %2777 = vtanh.f32 %v1484_v3 }
 0x8fb   :  { %v2776_v4 = vpop.eup %2775 }
 0x8fc   :  { %v1513_v46 = vadd.f32 1.0, %v2776_v4  ;;  %v2778_v50 = vpop.eup %2777 }
 0x8fe   :  { %2779 = vrcp.f32 %v1513_v46 }
 0x8ff   :  { %2781 = vpow2.f32 %v2534_v34 }
 0x90b   :  { %v2780_v0 = vpop.eup %2779 }
 0x90c   :  { %v1521_v54 = vmul.f32 %v2780_v0, %v2778_v50  ;;  %v2782_v35 = vpop.eup %2781  ;;  %v1520_v43 = vmul.f32 %v2780_v0, %v3581_v18 }
 0x90d   :  { %v1492_v22 = vadd.f32 1.0, %v2782_v35  ;;  %v4000_v35 = vld [vmem:[#allocation27_spill] sm:$0xff] }
 0x90e   :  { %1523 = vrot.lane.b32.xlu0 %v1521_v54, %s3015_s23 }
 0x90f   :  { %2783 = vrcp.f32 %v1492_v22 }
 0x91c   :  { %v2784_v27 = vpop.eup %2783 }
 0x93d   :  { %v1502_v28 = vpop.permute.xlu1 %1501 }
 0x93e   :  { %v3723_v41 = vadd.f32 %v1502_v28, %v1498_v58  ;;  %v4001_v28 = vld [vmem:[#allocation29_spill] sm:$0xff] }
 0x940   :  { %2785 = vtanh.f32 %v3723_v41 }
 0x941   :  { %2787 = vpow2.f32 %v2536_v32 }
 0x94d   :  { %v2786_v48 = vpop.eup %2785 }
 0x94e   :  { %v1506_v25 = vmul.f32 %v2786_v48, %v2784_v27  ;;  %v2788_v14 = vpop.eup %2787 }
 0x94f   :  { %v1514_v24 = vadd.f32 1.0, %v2788_v14 }
 0x950   :  { %1530 = vrot.lane.b32.xlu1 %v1506_v25, %s3015_s23 }
 0x951   :  { %2789 = vrcp.f32 %v1514_v24 }
 0x95e   :  { %v2790_v55 = vpop.eup %2789 }
 0x980   :  { %v1524_v44 = vpop.permute.xlu0 %1523 }
 0x981   :  { %v3728_v45 = vadd.f32 %v1524_v44, %v1520_v43 }
 0x983   :  { %2791 = vtanh.f32 %v3728_v45 }
 0x990   :  { %v2792_v5 = vpop.eup %2791 }
 0x991   :  { %v1528_v6 = vmul.f32 %v2792_v5, %v2790_v55 }
 0x993   :  { %1536 = vrot.lane.b32.xlu0 %v1528_v6, %s3015_s23 }
 0x9c2   :  { %v1531_v47 = vpop.permute.xlu1 %1530 }
 0x9c3   :  { %1534 = vst.msk [vmem:[#allocation3 + $0x20] sm:$0xff] %vm161_vm0, %v1531_v47  ;;  %2537 = vmatmul.mubr.msk.f32.vlgmr.msra.gmra.mxu0 %vm161_vm0, %v1531_v47 }
 0x9c4   :  { %1770 = vmatpush1.msra.mxu0 %v3590_v39  ;;  %1817 = vmatprep.mubr.f32.mxu0 %v3993_v51 }
 0x9c5   :  { %1771 = vmatprep.subr.mxu0 %v3597_v20 }
 0x9c6   :  { %1772 = vmatpush1.msra.mxu0 %v3603_v49 }
 0x9c7   :  { %1773 = vmatprep.subr.mxu0 %v3609_v19 }
 0x9c8   :  { %1774 = vmatpush1.msra.mxu0 %v3615_v11 }
 0x9c9   :  { %1775 = vmatprep.subr.mxu0 %v3621_v53 }
 0x9ca   :  { %1776 = vmatpush1.msra.mxu0 %v3627_v17 }
 0x9cb   :  { %1777 = vmatprep.subr.mxu0 %v3633_v13 }
 0x9cc   :  { %1778 = vmatpush1.msra.mxu0 %v3639_v16 }
 0x9cd   :  { %1779 = vmatprep.subr.mxu0 %v3645_v62 }
 0x9ce   :  { %1780 = vmatpush1.msra.mxu0 %v3651_v21 }
 0x9cf   :  { %1781 = vmatprep.subr.mxu0 %v3657_v15 }
 0x9d0   :  { %1782 = vmatpush1.msra.mxu0 %v3663_v12 }
 0x9d1   :  { %1783 = vmatprep.subr.mxu0 %v3669_v42 }
 0x9d2   :  { %1784 = vmatpush1.msra.mxu0 %v3675_v52 }
 0x9d3   :  { %1979 = vmatprep.subr.mxu0 %v3547_v23  ;;  %v3762_v23 = vld [vmem:[#allocation10 + $0x30] sm:$0xff] }
 0xa05   :  { %v1537_v18 = vpop.permute.xlu0 %1536 }
 0xa06   :  { %1540 = vst.msk [vmem:[#allocation4 + $0x18] sm:$0xff] %vm161_vm0, %v1537_v18  ;;  %2538 = vmatmul.mubr.msk.f32.vlgmr.msra.gmra.mxu1 %vm161_vm0, %v1537_v18 }
 0xa07   :  { %1843 = vmatpush1.msra.mxu1 %v3681_v26  ;;  %1890 = vmatprep.mubr.f32.mxu1 %v3993_v51 }
 0xa08   :  { %1844 = vmatprep.subr.mxu1 %v3685_v29 }
 0xa09   :  { %1845 = vmatpush1.msra.mxu1 %v3688_v30 }
 0xa0a   :  { %1846 = vmatprep.subr.mxu1 %v3691_v31 }
 0xa0b   :  { %1847 = vmatpush1.msra.mxu1 %v3694_v33 }
 0xa0c   :  { %1848 = vmatprep.subr.mxu1 %v3697_v36 }
 0xa0d   :  { %1849 = vmatpush1.msra.mxu1 %v3700_v37 }
 0xa0e   :  { %1850 = vmatprep.subr.mxu1 %v3703_v38 }
 0xa0f   :  { %1851 = vmatpush1.msra.mxu1 %v3762_v23 }
 0xa10   :  { %1852 = vmatprep.subr.mxu1 %v3765_v7 }
 0xa11   :  { %1853 = vmatpush1.msra.mxu1 %v3768_v56 }
 0xa12   :  { %1854 = vmatprep.subr.mxu1 %v3771_v8 }
 0xa13   :  { %1855 = vmatpush1.msra.mxu1 %v3774_v1 }
 0xa14   :  { %1856 = vmatprep.subr.mxu1 %v3777_v9 }
 0xa15   :  { %1857 = vmatpush1.msra.mxu1 %v3780_v57 }
 0xa16   :  { %2052 = vmatprep.subr.mxu1 %v3713_v40 }
 0xa83   :  { %v1609_v10 = vpop.f32.mrf.mxu0 }
 0xa84   :  { %v1689_v60 = vadd.f32 %v1609_v10, %v3998_v59 }
 0xa85   :  { %v1611_v63 = vpop.f32.mrf.mxu0 }
 0xa86   :  { %v2539_v61 = vmul.f32 -1.442695, %v1689_v60  ;;  %v1690_v3 = vadd.f32 %v1611_v63, %v3999_v2 }
 0xa88   :  { %2793 = vpow2.f32 %v2539_v61  ;;  %v2540_v43 = vmul.f32 -1.442695, %v1690_v3 }
 0xa89   :  { %2795 = vtanh.f32 %v1690_v3 }
 0xa95   :  { %v2794_v4 = vpop.eup %2793 }
 0xa96   :  { %v1701_v46 = vadd.f32 1.0, %v2794_v4  ;;  %v2796_v50 = vpop.eup %2795 }
 0xa98   :  { %2797 = vrcp.f32 %v1701_v46 }
 0xaa5   :  { %v2798_v0 = vpop.eup %2797 }
 0xaa6   :  { %v1709_v54 = vmul.f32 %v2798_v0, %v2796_v50  ;;  %v1708_v5 = vmul.f32 %v2798_v0, %v3723_v41 }
 0xaa8   :  { %1711 = vrot.lane.b32.xlu1 %v1709_v54, %s3015_s23 }
 0xac6   :  { %v1682_v34 = vpop.f32.mrf.mxu1 }
 0xac7   :  { %v1693_v40 = vadd.f32 %v1682_v34, %v4000_v35 }
 0xac8   :  { %v1684_v58 = vpop.f32.mrf.mxu1 }
 0xac9   :  { %v2541_v22 = vmul.f32 -1.442695, %v1693_v40  ;;  %v1694_v27 = vadd.f32 %v1684_v58, %v4001_v28 }
 0xacb   :  { %2799 = vpow2.f32 %v2541_v22  ;;  %v2542_v60 = vmul.f32 -1.442695, %v1694_v27 }
 0xacc   :  { %2801 = vtanh.f32 %v1694_v27 }
 0xad8   :  { %v2800_v48 = vpop.eup %2799 }
 0xad9   :  { %v1723_v25 = vadd.f32 1.0, %v2800_v48  ;;  %v2802_v32 = vpop.eup %2801 }
 0xadb   :  { %2803 = vrcp.f32 %v1723_v25 }
 0xadc   :  { %2805 = vpow2.f32 %v2540_v43 }
 0xae8   :  { %v2804_v14 = vpop.eup %2803 }
 0xae9   :  { %v1731_v24 = vmul.f32 %v2804_v14, %v2802_v32  ;;  %v2806_v44 = vpop.eup %2805  ;;  %v1730_v2 = vmul.f32 %v2804_v14, %v3728_v45 }
 0xaea   :  { %v1702_v55 = vadd.f32 1.0, %v2806_v44  ;;  %v2184_v44 = vld [vmem:[%s3969_s5 + $0x30] sm:$0xff] }
 0xaeb   :  { %1733 = vrot.lane.b32.xlu0 %v1731_v24, %s3015_s23 }
 0xaec   :  { %2807 = vrcp.f32 %v1702_v55  ;;  %v2170_v55 = vld [vmem:[#allocation3] sm:$0xff] }
 0xaf9   :  { %v2808_v18 = vpop.eup %2807 }
 0xb1a   :  { %v1712_v6 = vpop.permute.xlu1 %1711 }
 0xb1b   :  { %v3791_v47 = vadd.f32 %v1712_v6, %v1708_v5  ;;  %v2183_v5 = vld [vmem:[%s3969_s5 + $0x28] sm:$0xff]  ;;  %v2182_v6 = vld [vmem:[%s3969_s5 + $0x20] sm:$0xff] }
 0xb1d   :  { %2809 = vtanh.f32 %v3791_v47 }
 0xb1e   :  { %2811 = vpow2.f32 %v2542_v60  ;;  %v2171_v60 = vld [vmem:[#allocation3 + $0x8] sm:$0xff] }
 0xb2a   :  { %v2810_v10 = vpop.eup %2809 }
 0xb2b   :  { %v1716_v59 = vmul.f32 %v2810_v10, %v2808_v18  ;;  %v2812_v61 = vpop.eup %2811  ;;  %v2180_v18 = vld [vmem:[%s3969_s5 + $0x10] sm:$0xff]  ;;  %v2179_v10 = vld [vmem:[%s3969_s5 + $0x8] sm:$0xff] }
 0xb2c   :  { %v1724_v63 = vadd.f32 1.0, %v2812_v61  ;;  %v2172_v61 = vld [vmem:[#allocation3 + $0x10] sm:$0xff] }
 0xb2d   :  { %1740 = vrot.lane.b32.xlu1 %v1716_v59, %s3015_s23  ;;  %v2178_v59 = vld [vmem:[%s3969_s5] sm:$0xff] }
 0xb2e   :  { %2813 = vrcp.f32 %v1724_v63  ;;  %v2173_v63 = vld [vmem:[#allocation3 + $0x18] sm:$0xff] }
 0xb3b   :  { %v2814_v41 = vpop.eup %2813 }
 0xb5d   :  { %v1734_v3 = vpop.permute.xlu0 %1733 }
 0xb5e   :  { %v3796_v4 = vadd.f32 %v1734_v3, %v1730_v2  ;;  %v2174_v2 = vld [vmem:[#allocation3 + $0x20] sm:$0xff] }
 0xb60   :  { %2815 = vtanh.f32 %v3796_v4 }
 0xb6d   :  { %v2816_v46 = vpop.eup %2815 }
 0xb6e   :  { %v1738_v50 = vmul.f32 %v2816_v46, %v2814_v41  ;;  %v4006_v46 = vld [vmem:[#allocation26_spill] sm:$0xff] }
 0xb70   :  { %1746 = vrot.lane.b32.xlu0 %v1738_v50, %s3015_s23 }
 0xb9f   :  { %v1741_v0 = vpop.permute.xlu1 %1740 }
 0xba0   :  { %1744 = vst.msk [vmem:[#allocation3 + $0x28] sm:$0xff] %vm161_vm0, %v1741_v0  ;;  %2543 = vmatmul.mubr.msk.f32.vlgmr.msra.gmra.mxu0 %vm161_vm0, %v1741_v0 }
 0xba1   :  { %1980 = vmatpush1.msra.mxu0 %v3590_v39  ;;  %2027 = vmatprep.mubr.f32.mxu0 %v3993_v51 }
 0xba2   :  { %1981 = vmatprep.subr.mxu0 %v3597_v20  ;;  %v4002_v20 = vld [vmem:[#allocation22_spill] sm:$0xff] }
 0xba3   :  { %1982 = vmatpush1.msra.mxu0 %v3603_v49 }
 0xba4   :  { %1983 = vmatprep.subr.mxu0 %v3609_v19 }
 0xba5   :  { %1984 = vmatpush1.msra.mxu0 %v3615_v11 }
 0xba6   :  { %1985 = vmatprep.subr.mxu0 %v3621_v53  ;;  %v4003_v53 = vld [vmem:[#allocation24_spill] sm:$0xff] }
 0xba7   :  { %1986 = vmatpush1.msra.mxu0 %v3627_v17  ;;  %v2175_v3 = vld [vmem:[#allocation3 + $0x28] sm:$0xff] }
 0xba8   :  { %1987 = vmatprep.subr.mxu0 %v3633_v13 }
 0xba9   :  { %1988 = vmatpush1.msra.mxu0 %v3639_v16 }
 0xbaa   :  { %1989 = vmatprep.subr.mxu0 %v3645_v62 }
 0xbab   :  { %1990 = vmatpush1.msra.mxu0 %v3651_v21 }
 0xbac   :  { %1991 = vmatprep.subr.mxu0 %v3657_v15 }
 0xbad   :  { %1992 = vmatpush1.msra.mxu0 %v3663_v12 }
 0xbae   :  { %1993 = vmatprep.subr.mxu0 %v3669_v42  ;;  %v4004_v42 = vld [vmem:[#allocation23_spill] sm:$0xff] }
 0xbaf   :  { %1994 = vmatpush1.msra.mxu0 %v3675_v52 }
 0xbe2   :  { %v1747_v39 = vpop.permute.xlu0 %1746 }
 0xbe3   :  { %1750 = vst.msk [vmem:[#allocation4 + $0x10] sm:$0xff] %vm161_vm0, %v1747_v39  ;;  %2544 = vmatmul.mubr.msk.f32.vlgmr.msra.gmra.mxu1 %vm161_vm0, %v1747_v39 }
 0xbe4   :  { %2053 = vmatpush1.msra.mxu1 %v3681_v26  ;;  %2100 = vmatprep.mubr.f32.mxu1 %v3993_v51 }
 0xbe5   :  { %2054 = vmatprep.subr.mxu1 %v3685_v29 }
 0xbe6   :  { %2055 = vmatpush1.msra.mxu1 %v3688_v30  ;;  %v4005_v30 = vld [vmem:[#allocation25_spill] sm:$0xff] }
 0xbe7   :  { %2056 = vmatprep.subr.mxu1 %v3691_v31 }
 0xbe8   :  { %2057 = vmatpush1.msra.mxu1 %v3694_v33 }
 0xbe9   :  { %2058 = vmatprep.subr.mxu1 %v3697_v36 }
 0xbea   :  { %2059 = vmatpush1.msra.mxu1 %v3700_v37 }
 0xbeb   :  { %2060 = vmatprep.subr.mxu1 %v3703_v38 }
 0xbec   :  { %2061 = vmatpush1.msra.mxu1 %v3762_v23 }
 0xbed   :  { %2062 = vmatprep.subr.mxu1 %v3765_v7 }
 0xbee   :  { %2063 = vmatpush1.msra.mxu1 %v3768_v56 }
 0xbef   :  { %2064 = vmatprep.subr.mxu1 %v3771_v8 }
 0xbf0   :  { %2065 = vmatpush1.msra.mxu1 %v3774_v1 }
 0xbf1   :  { %2066 = vmatprep.subr.mxu1 %v3777_v9 }
 0xbf2   :  { %2067 = vmatpush1.msra.mxu1 %v3780_v57  ;;  %v2185_v57 = vld [vmem:[%s3969_s5 + $0x38] sm:$0xff] }
 0xbf3   :  { %2632 = vmatprep.subr.mxu1 %v2185_v57 }
 0xc60   :  { %v1819_v51 = vpop.f32.mrf.mxu0 }
 0xc61   :  { %v1899_v49 = vadd.f32 %v1819_v51, %v4002_v20  ;;  %v4007_v51 = vld [vmem:[#allocation28_spill] sm:$0xff] }
 0xc62   :  { %v1821_v11 = vpop.f32.mrf.mxu0 }
 0xc63   :  { %v2545_v19 = vmul.f32 -1.442695, %v1899_v49  ;;  %v1900_v17 = vadd.f32 %v1821_v11, %v4003_v53 }
 0xc65   :  { %2817 = vpow2.f32 %v2545_v19  ;;  %v2546_v23 = vmul.f32 -1.442695, %v1900_v17 }
 0xc66   :  { %2819 = vtanh.f32 %v1900_v17 }
 0xc72   :  { %v2818_v13 = vpop.eup %2817 }
 0xc73   :  { %v1911_v16 = vadd.f32 1.0, %v2818_v13  ;;  %v2820_v62 = vpop.eup %2819 }
 0xc75   :  { %2821 = vrcp.f32 %v1911_v16  ;;  %v4008_v16 = vld [vmem:[#allocation19_spill] sm:$0xff] }
 0xc82   :  { %v2822_v21 = vpop.eup %2821 }
 0xc83   :  { %v1919_v15 = vmul.f32 %v2822_v21, %v2820_v62  ;;  %v1918_v8 = vmul.f32 %v2822_v21, %v3791_v47  ;;  %v2181_v47 = vld [vmem:[%s3969_s5 + $0x18] sm:$0xff] }
 0xc85   :  { %1921 = vrot.lane.b32.xlu1 %v1919_v15, %s3015_s23 }
 0xca3   :  { %v1892_v12 = vpop.f32.mrf.mxu1 }
 0xca4   :  { %v1903_v52 = vadd.f32 %v1892_v12, %v4004_v42  ;;  %v4009_v12 = vld [vmem:[#allocation21_spill] sm:$0xff] }
 0xca5   :  { %v1894_v29 = vpop.f32.mrf.mxu1 }
 0xca6   :  { %v2547_v26 = vmul.f32 -1.442695, %v1903_v52  ;;  %v1904_v31 = vadd.f32 %v1894_v29, %v4005_v30 }
 0xca8   :  { %2823 = vpow2.f32 %v2547_v26  ;;  %v2548_v40 = vmul.f32 -1.442695, %v1904_v31 }
 0xca9   :  { %2825 = vtanh.f32 %v1904_v31 }
 0xcb5   :  { %v2824_v33 = vpop.eup %2823 }
 0xcb6   :  { %v1933_v36 = vadd.f32 1.0, %v2824_v33  ;;  %v2826_v37 = vpop.eup %2825 }
 0xcb8   :  { %2827 = vrcp.f32 %v1933_v36 }
 0xcb9   :  { %2829 = vpow2.f32 %v2546_v23 }
 0xcc5   :  { %v2828_v38 = vpop.eup %2827 }
 0xcc6   :  { %v1941_v45 = vmul.f32 %v2828_v38, %v2826_v37  ;;  %v2830_v7 = vpop.eup %2829  ;;  %v1940_v28 = vmul.f32 %v2828_v38, %v3796_v4 }
 0xcc7   :  { %v1912_v56 = vadd.f32 1.0, %v2830_v7  ;;  %v2201_v7 = vld [vmem:[%s3970_s6 + $0x38] sm:$0xff] }
 0xcc8   :  { %1943 = vrot.lane.b32.xlu0 %v1941_v45, %s3015_s23  ;;  %2604 = vmatprep.subr.mxu0 %v2201_v7 }
 0xcc9   :  { %2831 = vrcp.f32 %v1912_v56  ;;  %v2200_v56 = vld [vmem:[%s3970_s6 + $0x30] sm:$0xff] }
 0xcd6   :  { %v2832_v54 = vpop.eup %2831 }
 0xcf7   :  { %v1922_v1 = vpop.permute.xlu1 %1921 }
 0xcf8   :  { %v3843_v9 = vadd.f32 %v1922_v1, %v1918_v8 }
 0xcfa   :  { %2833 = vtanh.f32 %v3843_v9 }
 0xcfb   :  { %2835 = vpow2.f32 %v2548_v40 }
 0xd07   :  { %v2834_v34 = vpop.eup %2833 }
 0xd08   :  { %v1926_v35 = vmul.f32 %v2834_v34, %v2832_v54  ;;  %v2836_v22 = vpop.eup %2835 }
 0xd09   :  { %v1934_v58 = vadd.f32 1.0, %v2836_v22 }
 0xd0a   :  { %1950 = vrot.lane.b32.xlu1 %v1926_v35, %s3015_s23 }
 0xd0b   :  { %2837 = vrcp.f32 %v1934_v58 }
 0xd18   :  { %v2838_v25 = vpop.eup %2837 }
 0xd3a   :  { %v1944_v27 = vpop.permute.xlu0 %1943 }
 0xd3b   :  { %v3851_v48 = vadd.f32 %v1944_v27, %v1940_v28  ;;  %v2198_v28 = vld [vmem:[%s3970_s6 + $0x20] sm:$0xff]  ;;  %v2197_v27 = vld [vmem:[%s3970_s6 + $0x18] sm:$0xff] }
 0xd3d   :  { %2839 = vtanh.f32 %v3851_v48 }
 0xd4a   :  { %v2840_v32 = vpop.eup %2839 }
 0xd4b   :  { %v1948_v14 = vmul.f32 %v2840_v32, %v2838_v25  ;;  %v2196_v25 = vld [vmem:[%s3970_s6 + $0x10] sm:$0xff]  ;;  %v2194_v32 = vld [vmem:[%s3970_s6] sm:$0xff] }
 0xd4d   :  { %1956 = vrot.lane.b32.xlu0 %v1948_v14, %s3015_s23 }
 0xd7c   :  { %v1951_v24 = vpop.permute.xlu1 %1950 }
 0xd7d   :  { %1954 = vst.msk [vmem:[#allocation3 + $0x30] sm:$0xff] %vm161_vm0, %v1951_v24  ;;  %2549 = vmatmul.mubr.msk.f32.vlgmr.msra.gmra.mxu0 %vm161_vm0, %v1951_v24 }
 0xd7e   :  { %2605 = vmatpush3.msra.mxu0 %v2201_v7 }
 0xd7f   :  { %2606 = vmatprep.subr.mxu0 %v2200_v56 }
 0xd80   :  { %2607 = vmatpush3.msra.mxu0 %v2200_v56 }
 0xd84   :  { %v2176_v4 = vld [vmem:[#allocation3 + $0x30] sm:$0xff] }
 0xdbf   :  { %v1957_v43 = vpop.permute.xlu0 %1956 }
 0xdc0   :  { %1960 = vst.msk [vmem:[#allocation4 + $0x8] sm:$0xff] %vm161_vm0, %v1957_v43  ;;  %2550 = vmatmul.mubr.msk.f32.vlgmr.msra.gmra.mxu1 %vm161_vm0, %v1957_v43 }
 0xdc1   :  { %2633 = vmatpush3.msra.mxu1 %v2185_v57  ;;  %2648 = vmatprep.mubr.msk.f32.mxu1 %vm161_vm0, %v2170_v55 }
 0xdc2   :  { %2634 = vmatprep.subr.mxu1 %v2184_v44 }
 0xdc3   :  { %2635 = vmatpush3.msra.mxu1 %v2184_v44 }
 0xdc4   :  { %2636 = vmatprep.subr.mxu1 %v2183_v5 }
 0xdc5   :  { %2637 = vmatpush3.msra.mxu1 %v2183_v5 }
 0xdc6   :  { %2638 = vmatprep.subr.mxu1 %v2182_v6 }
 0xdc7   :  { %2639 = vmatpush3.msra.mxu1 %v2182_v6 }
 0xdc8   :  { %2640 = vmatprep.subr.mxu1 %v2181_v47 }
 0xdc9   :  { %2641 = vmatpush3.msra.mxu1 %v2181_v47  ;;  %v2187_v47 = vld [vmem:[#allocation4 + $0x8] sm:$0xff] }
 0xdca   :  { %2642 = vmatprep.subr.mxu1 %v2180_v18 }
 0xdcb   :  { %2643 = vmatpush3.msra.mxu1 %v2180_v18  ;;  %v2188_v18 = vld [vmem:[#allocation4 + $0x10] sm:$0xff] }
 0xdcc   :  { %2644 = vmatprep.subr.mxu1 %v2179_v10 }
 0xdcd   :  { %2645 = vmatpush3.msra.mxu1 %v2179_v10  ;;  %v2189_v10 = vld [vmem:[#allocation4 + $0x18] sm:$0xff] }
 0xdce   :  { %2646 = vmatprep.subr.mxu1 %v2178_v59 }
 0xdcf   :  { %2647 = vmatpush3.msra.mxu1 %v2178_v59  ;;  %v2190_v59 = vld [vmem:[#allocation4 + $0x20] sm:$0xff] }
 0xdd0   :  { %2649 = vmatmul.mubr.msk.f32.vlgmr.msra.gmra.mxu1 %vm161_vm0, %v2171_v60  ;;  %v2191_v60 = vld [vmem:[#allocation4 + $0x28] sm:$0xff] }
 0xdd1   :  { %2651 = vmatprep.mubr.msk.f32.mxu1 %vm161_vm0, %v2172_v61  ;;  %v2192_v61 = vld [vmem:[#allocation4 + $0x30] sm:$0xff] }
 0xdd4   :  { %2652 = vmatmul.mubr.msk.f32.gmra.mxu1 %vm161_vm0, %v2173_v63  ;;  %v2193_v63 = vld [vmem:[#allocation4 + $0x38] sm:$0xff] }
 0xdd5   :  { %2654 = vmatprep.mubr.msk.f32.mxu1 %vm161_vm0, %v2174_v2 }
 0xdd8   :  { %2655 = vmatmul.mubr.msk.f32.gmra.mxu1 %vm161_vm0, %v2175_v3 }
 0xdd9   :  { %2657 = vmatprep.mubr.msk.f32.mxu1 %vm161_vm0, %v2176_v4 }
 0xe3d   :  { %v2029_v41 = vpop.f32.mrf.mxu0 }
 0xe3e   :  { %v2109_v50 = vadd.f32 %v2029_v41, %v4006_v46 }
 0xe3f   :  { %v2031_v39 = vpop.f32.mrf.mxu0 }
 0xe40   :  { %v2551_v0 = vmul.f32 -1.442695, %v2109_v50  ;;  %v2110_v20 = vadd.f32 %v2031_v39, %v4007_v51  ;;  %v2571_v50 = vld [vmem:[#allocation12] ss:$0 sm:$0xff] }
 0xe42   :  { %2841 = vpow2.f32 %v2551_v0  ;;  %v2552_v33 = vmul.f32 -1.442695, %v2110_v20 }
 0xe43   :  { %2843 = vtanh.f32 %v2110_v20 }
 0xe4f   :  { %v2842_v49 = vpop.eup %2841 }
 0xe50   :  { %v2121_v19 = vadd.f32 1.0, %v2842_v49  ;;  %v2844_v11 = vpop.eup %2843 }
 0xe52   :  { %2845 = vrcp.f32 %v2121_v19 }
 0xe5f   :  { %v2846_v53 = vpop.eup %2845 }
 0xe60   :  { %v2129_v17 = vmul.f32 %v2846_v53, %v2844_v11  ;;  %v2128_v38 = vmul.f32 %v2846_v53, %v3843_v9  ;;  %v2199_v9 = vld [vmem:[%s3970_s6 + $0x28] sm:$0xff] }
 0xe61   :  { %2608 = vmatprep.subr.mxu0 %v2199_v9 }
 0xe62   :  { %2131 = vrot.lane.b32.xlu1 %v2129_v17, %s3015_s23  ;;  %2609 = vmatpush3.msra.mxu0 %v2199_v9 }
 0xe63   :  { %2610 = vmatprep.subr.mxu0 %v2198_v28 }
 0xe64   :  { %2611 = vmatpush3.msra.mxu0 %v2198_v28 }
 0xe65   :  { %2612 = vmatprep.subr.mxu0 %v2197_v27 }
 0xe66   :  { %2613 = vmatpush3.msra.mxu0 %v2197_v27 }
 0xe67   :  { %2614 = vmatprep.subr.mxu0 %v2196_v25 }
 0xe68   :  { %2615 = vmatpush3.msra.mxu0 %v2196_v25 }
 0xe80   :  { %v2102_v13 = vpop.f32.mrf.mxu1 }
 0xe81   :  { %v2113_v62 = vadd.f32 %v2102_v13, %v4008_v16 }
 0xe82   :  { %v2104_v15 = vpop.f32.mrf.mxu1 }
 0xe83   :  { %v2553_v21 = vmul.f32 -1.442695, %v2113_v62  ;;  %v2114_v42 = vadd.f32 %v2104_v15, %v4009_v12 }
 0xe85   :  { %2847 = vpow2.f32 %v2553_v21  ;;  %v2554_v54 = vmul.f32 -1.442695, %v2114_v42 }
 0xe86   :  { %2849 = vtanh.f32 %v2114_v42 }
 0xe90   :  { %v2650_v2 = vpop.f32.mrf.mxu1 }
 0xe92   :  { %v2848_v52 = vpop.eup %2847  ;;  %v2421_v3 = vpop.f32.mrf.mxu1 }
 0xe93   :  { %v2143_v26 = vadd.f32 1.0, %v2848_v52  ;;  %v2850_v29 = vpop.eup %2849 }
 0xe94   :  { %v2653_v4 = vpop.f32.mrf.mxu1 }
 0xe95   :  { %2851 = vrcp.f32 %v2143_v26 }
 0xe96   :  { %2853 = vpow2.f32 %v2552_v33  ;;  %v2431_v41 = vpop.f32.mrf.mxu1 }
 0xe98   :  { %v2656_v49 = vpop.f32.mrf.mxu1 }
 0xe9a   :  { %v2441_v62 = vpop.f32.mrf.mxu1 }
 0xea2   :  { %v2852_v30 = vpop.eup %2851 }
 0xea3   :  { %v2151_v31 = vmul.f32 %v2852_v30, %v2850_v29  ;;  %v2854_v36 = vpop.eup %2853  ;;  %v2150_v40 = vmul.f32 %v2852_v30, %v3851_v48  ;;  %v2195_v48 = vld [vmem:[%s3970_s6 + $0x8] sm:$0xff] }
 0xea4   :  { %v2122_v37 = vadd.f32 1.0, %v2854_v36  ;;  %2616 = vmatprep.subr.mxu0 %v2195_v48 }
 0xea5   :  { %2153 = vrot.lane.b32.xlu0 %v2151_v31, %s3015_s23  ;;  %2617 = vmatpush3.msra.mxu0 %v2195_v48 }
 0xea6   :  { %2855 = vrcp.f32 %v2122_v37  ;;  %2618 = vmatprep.subr.mxu0 %v2194_v32 }
 0xea7   :  { %2619 = vmatpush3.msra.mxu0 %v2194_v32 }
 0xeb3   :  { %v2856_v8 = vpop.eup %2855 }
 0xed4   :  { %v2132_v45 = vpop.permute.xlu1 %2131 }
 0xed5   :  { %v2134_v23 = vadd.f32 %v2132_v45, %v2128_v38 }
 0xed7   :  { %2857 = vtanh.f32 %v2134_v23 }
 0xed8   :  { %2859 = vpow2.f32 %v2554_v54 }
 0xee4   :  { %v2858_v1 = vpop.eup %2857 }
 0xee5   :  { %v2136_v57 = vmul.f32 %v2858_v1, %v2856_v8  ;;  %v2860_v34 = vpop.eup %2859 }
 0xee6   :  { %v2144_v35 = vadd.f32 1.0, %v2860_v34 }
 0xee7   :  { %2160 = vrot.lane.b32.xlu1 %v2136_v57, %s3015_s23 }
 0xee8   :  { %2861 = vrcp.f32 %v2144_v35 }
 0xef5   :  { %v2862_v14 = vpop.eup %2861 }
 0xf17   :  { %v2154_v22 = vpop.permute.xlu0 %2153 }
 0xf18   :  { %v2156_v58 = vadd.f32 %v2154_v22, %v2150_v40 }
 0xf1a   :  { %2863 = vtanh.f32 %v2156_v58 }
 0xf27   :  { %v2864_v24 = vpop.eup %2863 }
 0xf28   :  { %v2158_v43 = vmul.f32 %v2864_v24, %v2862_v14 }
 0xf2a   :  { %2166 = vrot.lane.b32.xlu0 %v2158_v43, %s3015_s23 }
 0xf59   :  { %v2161_v44 = vpop.permute.xlu1 %2160 }
 0xf5a   :  { %2164 = vst.msk [vmem:[#allocation3 + $0x38] sm:$0xff] %vm161_vm0, %v2161_v44 }
 0xf61   :  { %v2177_v55 = vld [vmem:[#allocation3 + $0x38] sm:$0xff] }
 0xf62   :  { %2658 = vmatmul.mubr.msk.f32.gmra.mxu1 %vm161_vm0, %v2177_v55 }
 0xf9c   :  { %v2167_v5 = vpop.permute.xlu0 %2166 }
 0xf9d   :  { %2169 = vst.msk [vmem:[#allocation4] sm:$0xff] %vm161_vm0, %v2167_v5 }
 0xfa4   :  { %v2186_v6 = vld [vmem:[#allocation4] sm:$0xff] }
 0xfa5   :  { %2620 = vmatprep.mubr.msk.f32.mxu0 %vm161_vm0, %v2186_v6 }
 0xfa6   :  { %2621 = vmatmul.mubr.msk.f32.vlgmr.msra.gmra.mxu0 %vm161_vm0, %v2187_v47 }
 0xfa7   :  { %2623 = vmatprep.mubr.msk.f32.mxu0 %vm161_vm0, %v2188_v18 }
 0xfaa   :  { %2624 = vmatmul.mubr.msk.f32.gmra.mxu0 %vm161_vm0, %v2189_v10 }
 0xfab   :  { %2626 = vmatprep.mubr.msk.f32.mxu0 %vm161_vm0, %v2190_v59 }
 0xfae   :  { %2627 = vmatmul.mubr.msk.f32.gmra.mxu0 %vm161_vm0, %v2191_v60 }
 0xfaf   :  { %2629 = vmatprep.mubr.msk.f32.mxu0 %vm161_vm0, %v2192_v61 }
 0xfb2   :  { %2630 = vmatmul.mubr.msk.f32.gmra.mxu0 %vm161_vm0, %v2193_v63 }
0x1022   :  { %v2659_v42 = vpop.f32.mrf.mxu1 }
0x1024   :  { %v2451_v36 = vpop.f32.mrf.mxu1 }
0x1066   :  { %v2622_v46 = vpop.f32.mrf.mxu0 }
0x1067   :  { %v2427_v0 = vadd.f32 %v2650_v2, %v2622_v46 }
0x1068   :  { %v2292_v39 = vpop.f32.mrf.mxu0 }
0x1069   :  { %v2468_v51 = vadd.f32 %v2571_v50, %v2427_v0  ;;  %v2422_v20 = vadd.f32 %v2421_v3, %v2292_v39 }
0x106a   :  { %v2625_v19 = vpop.f32.mrf.mxu0 }
0x106b   :  { %2477 = vst.msk [vmem:[%s3974_s10 + $0x8] sm:$0xff] %vm2475_vm1, %v2468_v51  ;;  %v2467_v11 = vadd.f32 %v2571_v50, %v2422_v20  ;;  %v2437_v53 = vadd.f32 %v2653_v4, %v2625_v19 }
0x106c   :  { %v2302_v17 = vpop.f32.mrf.mxu0 }
0x106d   :  { %2476 = vst.msk [vmem:[%s3974_s10] sm:$0xff] %vm2475_vm1, %v2467_v11  ;;  %v2470_v13 = vadd.f32 %v2571_v50, %v2437_v53  ;;  %v2432_v16 = vadd.f32 %v2431_v41, %v2302_v17 }
0x106e   :  { %v2628_v21 = vpop.f32.mrf.mxu0 }
0x106f   :  { %2479 = vst.msk [vmem:[%s3974_s10 + $0x18] sm:$0xff] %vm2475_vm1, %v2470_v13  ;;  %v2469_v15 = vadd.f32 %v2571_v50, %v2432_v16  ;;  %v2447_v12 = vadd.f32 %v2656_v49, %v2628_v21 }
0x1070   :  { %v2312_v52 = vpop.f32.mrf.mxu0 }
0x1071   :  { %2478 = vst.msk [vmem:[%s3974_s10 + $0x10] sm:$0xff] %vm2475_vm1, %v2469_v15  ;;  %v2472_v26 = vadd.f32 %v2571_v50, %v2447_v12  ;;  %v2442_v29 = vadd.f32 %v2441_v62, %v2312_v52 }
0x1072   :  { %v2631_v30 = vpop.f32.mrf.mxu0 }
0x1073   :  { %2481 = vst.msk [vmem:[%s3974_s10 + $0x28] sm:$0xff] %vm2475_vm1, %v2472_v26  ;;  %v2471_v31 = vadd.f32 %v2571_v50, %v2442_v29  ;;  %v2457_v33 = vadd.f32 %v2659_v42, %v2631_v30 }
0x1074   :  { %v2322_v37 = vpop.f32.mrf.mxu0 }
0x1075   :  { %2480 = vst.msk [vmem:[%s3974_s10 + $0x20] sm:$0xff] %vm2475_vm1, %v2471_v31  ;;  %v2474_v38 = vadd.f32 %v2571_v50, %v2457_v33  ;;  %v2452_v45 = vadd.f32 %v2451_v36, %v2322_v37 }
0x1077   :  { %2483 = vst.msk [vmem:[%s3974_s10 + $0x38] sm:$0xff] %vm2475_vm1, %v2474_v38  ;;  %v2473_v23 = vadd.f32 %v2571_v50, %v2452_v45 }
0x1079   :  { %2482 = vst.msk [vmem:[%s3974_s10 + $0x30] sm:$0xff] %vm2475_vm1, %v2473_v23 }
0x107a   :  { %2488 = vsyncpa [#allocation6], 1 }
0x107b   :  { %2489 = vsyncpa [#allocation8], 1 }
0x107c   :  { %2490 = vsyncpa [#allocation11], 1 }

</bundles_post_ra>
